<compile_context>
chip_gen: v7x
topology: tpu7x:2x2x1
jax: 0.10.0
libtpu: 0.0.40
codegen_flags: <defaults>
</compile_context>

<pallas_src>
import functools

import jax
import jax.numpy as jnp
from jax.experimental import pallas as pl
from jax.experimental.pallas import tpu as pltpu


def _cnn_kernel(W, F, C1, C2, H, O_pad, T, Bt, mm_dtype,
                x_ref, w1_ref, b1_ref, w2_ref, b2_ref, w3_ref, b3_ref,
                wih_ref, whh_ref, bih_ref, bhh_ref, wfc_ref, bfc_ref,
                out_ref):
    f32 = jnp.float32
    N0 = W * Bt                                  # time-major rows: r = w*Bt + b

    # ---- conv1: Conv2d(1, C1, kernel=(1, F)) + ReLU --------------------------
    # One matmul against the block-diagonal kron(I_W, w1) in the (Bt, W*F)
    # lane layout (M=Bt, K=W*F, N=W*C1): much better MXU fill than a K=F dot
    # with M=W*Bt, and bias+ReLU run on lane-dense (Bt, W*C1) vregs.
    xf = x_ref[...]                              # (Bt, W*F), original layout
    h1l = jnp.dot(xf.astype(mm_dtype), w1_ref[...],
                  preferred_element_type=f32) + b1_ref[...]
    h1l = jnp.maximum(h1l, 0.0)                  # (Bt, W*C1)

    # Time-major reorder on the resident tile (only Bt*W*C1 elements): row
    # r = w*Bt + b.  All downstream sublane slices are then Bt-aligned.
    h1 = jnp.concatenate([h1l[:, w * C1:(w + 1) * C1] for w in range(W)],
                         axis=0)                 # (W*Bt, C1)

    def shifted(v, n_rows, c):
        # rows of (w-1, b) / (w+1, b) with zero 'same' padding at w=0 / w=W-1.
        # All slice offsets are multiples of Bt (>= 8) -> tile-aligned.
        z = jnp.zeros((Bt, c), f32)
        prev = jnp.concatenate([z, v[:n_rows - Bt, :]], axis=0)
        nxt = jnp.concatenate([v[Bt:, :], z], axis=0)
        return prev, nxt

    # ---- conv2: Conv2d(C1, C2, (3,1), 'same') + ReLU; taps fused in one dot --
    p1, n1 = shifted(h1, N0, C1)
    xin2 = jnp.concatenate([p1, h1, n1], axis=1)                  # (N0, 3*C1)
    h2 = jnp.dot(xin2.astype(mm_dtype), w2_ref[...],
                 preferred_element_type=f32) + b2_ref[...]
    h2 = jnp.maximum(h2, 0.0)                                     # (N0, C2)

    # ---- MaxPool2d((2,1)): max of adjacent-w Bt-row slabs --------------------
    N1 = (W // 2) * Bt
    h2b = h2.reshape(W // 2, 2 * Bt, C2)
    h2p = jnp.maximum(h2b[:, :Bt, :], h2b[:, Bt:, :]).reshape(N1, C2)

    # ---- conv3: Conv2d(C2, C2, (3,1), 'same') + ReLU -------------------------
    p2, n2 = shifted(h2p, N1, C2)
    xin3 = jnp.concatenate([p2, h2p, n2], axis=1)                 # (N1, 3*C2)
    h3 = jnp.dot(xin3.astype(mm_dtype), w3_ref[...],
                 preferred_element_type=f32) + b3_ref[...]
    h3 = jnp.maximum(h3, 0.0)                                     # (N1, C2)

    # ---- second MaxPool2d((2,1)) ---------------------------------------------
    N2 = T * Bt
    h3b = h3.reshape(T, 2 * Bt, C2)
    feat = jnp.maximum(h3b[:, :Bt, :], h3b[:, Bt:, :]).reshape(N2, C2)

    # ---- GRU (1 layer, batch_first, h0 = 0); PyTorch gate order (r, z, n) ----
    # Input-gate matmul hoisted out of the recurrence; b_hr|b_hz folded into
    # the input gates once; b_hn broadcast hoisted; r|z sigmoid merged.
    gi = jnp.dot(feat.astype(mm_dtype), wih_ref[...],
                 preferred_element_type=f32) + bih_ref[...]       # (N2, 3H)
    bhh = bhh_ref[...]                                            # (1, 3H)
    gi_rz = gi[:, :2 * H] + bhh[:, :2 * H]                        # (N2, 2H)
    gi_n = gi[:, 2 * H:]                                          # (N2, H)
    bhh_n = jnp.broadcast_to(bhh[:, 2 * H:], (Bt, H))             # hoisted

    whh = whh_ref[...]                                            # (H, 3H) f32

    # t = 0 peeled: h == 0 so gh == 0 and the h @ Whh matmul is skipped.
    rz = jax.nn.sigmoid(gi_rz[0:Bt, :])
    r, z = rz[:, :H], rz[:, H:]
    n = jnp.tanh(gi_n[0:Bt, :] + r * bhh_n)
    h = (1.0 - z) * n

    for t in range(1, T):                        # rows [t*Bt, (t+1)*Bt), aligned
        lo = t * Bt
        gh = jnp.dot(h, whh, preferred_element_type=f32)          # (Bt, 3H)
        rz = jax.nn.sigmoid(gi_rz[lo:lo + Bt, :] + gh[:, :2 * H])
        r, z = rz[:, :H], rz[:, H:]
        n = jnp.tanh(gi_n[lo:lo + Bt, :] + r * (gh[:, 2 * H:] + bhh_n))
        h = (1.0 - z) * n + z * h

    # ---- fc: Linear(H, O) on the final hidden state (lane-padded to O_pad) ---
    out_ref[...] = (jnp.dot(h, wfc_ref[...], preferred_element_type=f32)
                    + bfc_ref[...])              # (Bt, O_pad), unmasked store


def cnn_forward(x, params, *, n_filters=32, hidden_dim=32, output_dim=3,
                batch_tile=256, matmul_dtype=jnp.float32):
    # TODO(synk): only the module's default scale=1 branch is implemented
    # (scale>1 adds strided-subsampled conv stacks concatenated before the GRU).
    B, W, F = x.shape
    assert W % 4 == 0, "window_size must be divisible by 4 (two (2,1) pools)"
    C1 = n_filters // 2
    C2 = n_filters
    H = hidden_dim
    O = output_dim
    T = W // 4
    O_pad = -(-O // 128) * 128                   # lane-dense output stores

    # Batch tile: multiple of 8 sublanes so every in-kernel slice/reshape is
    # tile-aligned.  Default 256 keeps peak live intermediates well under the
    # 48 MiB limit below on every generation (v7x has 64 MiB physical VMEM);
    # on v6e (128 MiB, single TC) batch_tile=512 with a higher limit can be
    # slightly better.  On v7x prefer a batch_tile that gives an even number
    # of grid steps so both TensorCores stay busy.
    Bt = min(batch_tile, -(-B // 8) * 8)
    Bt = max(8, -(-Bt // 8) * 8)
    B_pad = -(-B // Bt) * Bt

    # No HBM transpose of x: a free row-major reshape, the time-major reorder
    # happens in-kernel on the resident tile.
    xf = x.reshape(B, W * F)
    if B_pad != B:
        xf = jnp.pad(xf, ((0, B_pad - B), (0, 0)))

    mmdt = matmul_dtype
    # conv1 as block-diagonal matmul weight: kron(I_W, w1) -> (W*F, W*C1).
    w1_bd = jnp.kron(jnp.eye(W, dtype=jnp.float32), params['w1']).astype(mmdt)
    b1_t = jnp.tile(params['b1'], (1, W))                        # (1, W*C1)
    w2 = params['w2'].astype(mmdt)
    w3 = params['w3'].astype(mmdt)
    wih = params['wih'].astype(mmdt)
    # fc padded to a 128-lane-wide output slab (unmasked vst + dense writeback).
    wfc_p = jnp.pad(params['wfc'], ((0, 0), (0, O_pad - O)))
    bfc_p = jnp.pad(params['bfc'], ((0, 0), (0, O_pad - O)))

    kernel = functools.partial(_cnn_kernel, W, F, C1, C2, H, O_pad, T, Bt, mmdt)

    def full_spec(shape):
        return pl.BlockSpec(shape, lambda i, _n=len(shape): (0,) * _n)

    in_specs = [
        pl.BlockSpec((Bt, W * F), lambda i: (i, 0)),   # one batch tile / program
        full_spec(w1_bd.shape), full_spec(b1_t.shape),
        full_spec(w2.shape), full_spec(params['b2'].shape),
        full_spec(w3.shape), full_spec(params['b3'].shape),
        full_spec(wih.shape), full_spec(params['whh'].shape),
        full_spec(params['bih'].shape), full_spec(params['bhh'].shape),
        full_spec(wfc_p.shape), full_spec(bfc_p.shape),
    ]

    grid_spec = pltpu.PrefetchScalarGridSpec(
        num_scalar_prefetch=0,
        grid=(B_pad // Bt,),
        in_specs=in_specs,
        out_specs=pl.BlockSpec((Bt, O_pad), lambda i: (i, 0)),
    )

    out = pl.pallas_call(
        kernel,
        out_shape=jax.ShapeDtypeStruct((B_pad, O_pad), jnp.float32),
        grid_spec=grid_spec,
        compiler_params=pltpu.CompilerParams(
            dimension_semantics=("parallel",),     # batch tiles are independent
            vmem_limit_bytes=48 * 1024 * 1024),    # above 16/32 MiB scoped default
    )(xf, w1_bd, b1_t, w2, params['b2'], w3, params['b3'],
      wih, params['whh'], params['bih'], params['bhh'], wfc_p, bfc_p)
    return out[:B, :O]


if __name__ == "__main__":
    key = jax.random.PRNGKey(0)
    # Small shapes consistent with the module (scale=1): window=16, features=3.
    B, W, F = 2, 16, 3
    n_filters, hidden_dim, output_dim = 32, 32, 3
    C1, C2, H, O = n_filters // 2, n_filters, hidden_dim, output_dim

    keys = jax.random.split(key, 16)

    def init(k, shape, scale=0.1):
        return (scale * jax.random.normal(k, shape)).astype(jnp.float32)

    params = {
        'w1':  init(keys[0], (F, C1)),           # conv1 (1, F) kernel -> (F, C1)
        'b1':  init(keys[1], (1, C1)),
        'w2':  init(keys[2], (3 * C1, C2)),      # conv2 taps stacked [w-1; w; w+1]
        'b2':  init(keys[3], (1, C2)),
        'w3':  init(keys[4], (3 * C2, C2)),      # conv3 taps stacked [w-1; w; w+1]
        'b3':  init(keys[5], (1, C2)),
        'wih': init(keys[6], (C2, 3 * H)),       # GRU input weights (r|z|n)
        'whh': init(keys[7], (H, 3 * H)),        # GRU hidden weights (r|z|n)
        'bih': init(keys[8], (1, 3 * H)),
        'bhh': init(keys[9], (1, 3 * H)),
        'wfc': init(keys[10], (H, O)),
        'bfc': init(keys[11], (1, O)),
    }

    x = init(keys[12], (B, W, F), scale=1.0)

    out = cnn_forward(x, params,
                      n_filters=n_filters, hidden_dim=hidden_dim,
                      output_dim=output_dim)
    out = jax.block_until_ready(out)
    assert out.shape == (B, O) and out.dtype == jnp.float32
    print("KERNEL_OK")
</pallas_src>

<mosaic_0001>
module attributes {stable_mosaic.version = 11 : i64} {
  func.func @_cnn_kernel(%arg0: i32, %arg1: memref<8x48xf32, #tpu.memory_space<vmem>>, %arg2: memref<48x256xf32, #tpu.memory_space<vmem>>, %arg3: memref<1x256xf32, #tpu.memory_space<vmem>>, %arg4: memref<48x32xf32, #tpu.memory_space<vmem>>, %arg5: memref<1x32xf32, #tpu.memory_space<vmem>>, %arg6: memref<96x32xf32, #tpu.memory_space<vmem>>, %arg7: memref<1x32xf32, #tpu.memory_space<vmem>>, %arg8: memref<32x96xf32, #tpu.memory_space<vmem>>, %arg9: memref<32x96xf32, #tpu.memory_space<vmem>>, %arg10: memref<1x96xf32, #tpu.memory_space<vmem>>, %arg11: memref<1x96xf32, #tpu.memory_space<vmem>>, %arg12: memref<32x128xf32, #tpu.memory_space<vmem>>, %arg13: memref<1x128xf32, #tpu.memory_space<vmem>>, %arg14: memref<8x128xf32, #tpu.memory_space<vmem>>) attributes {dimension_semantics = [#tpu.dimension_semantics<parallel>], iteration_bounds = array<i64: 1>, scalar_prefetch = 0 : i64, scratch_operands = 0 : i64, tpu.core_type = #tpu.core_type<tc>, window_params = [{transform_indices = @transform_0, window_bounds = array<i64: 8, 48>}, {pipeline_mode = #tpu.pipeline_mode<synchronous>, transform_indices = @transform_1, window_bounds = array<i64: 48, 256>}, {pipeline_mode = #tpu.pipeline_mode<synchronous>, transform_indices = @transform_2, window_bounds = array<i64: 1, 256>}, {pipeline_mode = #tpu.pipeline_mode<synchronous>, transform_indices = @transform_3, window_bounds = array<i64: 48, 32>}, {pipeline_mode = #tpu.pipeline_mode<synchronous>, transform_indices = @transform_4, window_bounds = array<i64: 1, 32>}, {pipeline_mode = #tpu.pipeline_mode<synchronous>, transform_indices = @transform_5, window_bounds = array<i64: 96, 32>}, {pipeline_mode = #tpu.pipeline_mode<synchronous>, transform_indices = @transform_6, window_bounds = array<i64: 1, 32>}, {pipeline_mode = #tpu.pipeline_mode<synchronous>, transform_indices = @transform_7, window_bounds = array<i64: 32, 96>}, {pipeline_mode = #tpu.pipeline_mode<synchronous>, transform_indices = @transform_8, window_bounds = array<i64: 32, 96>}, {pipeline_mode = #tpu.pipeline_mode<synchronous>, transform_indices = @transform_9, window_bounds = array<i64: 1, 96>}, {pipeline_mode = #tpu.pipeline_mode<synchronous>, transform_indices = @transform_10, window_bounds = array<i64: 1, 96>}, {pipeline_mode = #tpu.pipeline_mode<synchronous>, transform_indices = @transform_11, window_bounds = array<i64: 32, 128>}, {pipeline_mode = #tpu.pipeline_mode<synchronous>, transform_indices = @transform_12, window_bounds = array<i64: 1, 128>}, {transform_indices = @transform_13, window_bounds = array<i64: 8, 128>}]} {
    %c0 = arith.constant 0 : index
    %c0_0 = arith.constant 0 : index
    %0 = vector.load %arg1[%c0, %c0_0] : memref<8x48xf32, #tpu.memory_space<vmem>>, vector<8x48xf32>
    %c0_1 = arith.constant 0 : index
    %c0_2 = arith.constant 0 : index
    %1 = vector.load %arg2[%c0_1, %c0_2] : memref<48x256xf32, #tpu.memory_space<vmem>>, vector<48x256xf32>
    %cst = arith.constant dense<0.000000e+00> : vector<8x256xf32>
    %2 = tpu.matmul %0, %1, %cst {dimension_numbers = #tpu.dot_dimension_numbers<[1], [0], [0], [1], [0, 0, 1, 1], [], []>} : vector<8x48xf32>, vector<48x256xf32>, vector<8x256xf32> -> vector<8x256xf32>
    %c0_3 = arith.constant 0 : index
    %c0_4 = arith.constant 0 : index
    %3 = vector.load %arg3[%c0_3, %c0_4] : memref<1x256xf32, #tpu.memory_space<vmem>>, vector<1x256xf32>
    %4 = vector.broadcast %3 : vector<1x256xf32> to vector<8x256xf32>
    %5 = arith.addf %2, %4 : vector<8x256xf32>
    %cst_5 = arith.constant 0.000000e+00 : f32
    %6 = vector.broadcast %cst_5 : f32 to vector<8x256xf32>
    %7 = arith.maximumf %5, %6 : vector<8x256xf32>
    %8 = vector.extract_strided_slice %7 {offsets = [0, 0], sizes = [8, 16], strides = [1, 1]} : vector<8x256xf32> to vector<8x16xf32>
    %9 = vector.extract_strided_slice %7 {offsets = [0, 16], sizes = [8, 16], strides = [1, 1]} : vector<8x256xf32> to vector<8x16xf32>
    %10 = vector.extract_strided_slice %7 {offsets = [0, 32], sizes = [8, 16], strides = [1, 1]} : vector<8x256xf32> to vector<8x16xf32>
    %11 = vector.extract_strided_slice %7 {offsets = [0, 48], sizes = [8, 16], strides = [1, 1]} : vector<8x256xf32> to vector<8x16xf32>
    %12 = vector.extract_strided_slice %7 {offsets = [0, 64], sizes = [8, 16], strides = [1, 1]} : vector<8x256xf32> to vector<8x16xf32>
    %13 = vector.extract_strided_slice %7 {offsets = [0, 80], sizes = [8, 16], strides = [1, 1]} : vector<8x256xf32> to vector<8x16xf32>
    %14 = vector.extract_strided_slice %7 {offsets = [0, 96], sizes = [8, 16], strides = [1, 1]} : vector<8x256xf32> to vector<8x16xf32>
    %15 = vector.extract_strided_slice %7 {offsets = [0, 112], sizes = [8, 16], strides = [1, 1]} : vector<8x256xf32> to vector<8x16xf32>
    %16 = vector.extract_strided_slice %7 {offsets = [0, 128], sizes = [8, 16], strides = [1, 1]} : vector<8x256xf32> to vector<8x16xf32>
    %17 = vector.extract_strided_slice %7 {offsets = [0, 144], sizes = [8, 16], strides = [1, 1]} : vector<8x256xf32> to vector<8x16xf32>
    %18 = vector.extract_strided_slice %7 {offsets = [0, 160], sizes = [8, 16], strides = [1, 1]} : vector<8x256xf32> to vector<8x16xf32>
    %19 = vector.extract_strided_slice %7 {offsets = [0, 176], sizes = [8, 16], strides = [1, 1]} : vector<8x256xf32> to vector<8x16xf32>
    %20 = vector.extract_strided_slice %7 {offsets = [0, 192], sizes = [8, 16], strides = [1, 1]} : vector<8x256xf32> to vector<8x16xf32>
    %21 = vector.extract_strided_slice %7 {offsets = [0, 208], sizes = [8, 16], strides = [1, 1]} : vector<8x256xf32> to vector<8x16xf32>
    %22 = vector.extract_strided_slice %7 {offsets = [0, 224], sizes = [8, 16], strides = [1, 1]} : vector<8x256xf32> to vector<8x16xf32>
    %23 = vector.extract_strided_slice %7 {offsets = [0, 240], sizes = [8, 16], strides = [1, 1]} : vector<8x256xf32> to vector<8x16xf32>
    %24 = tpu.concatenate %8, %9, %10, %11, %12, %13, %14, %15, %16, %17, %18, %19, %20, %21, %22, %23 in 0 : vector<8x16xf32>, vector<8x16xf32>, vector<8x16xf32>, vector<8x16xf32>, vector<8x16xf32>, vector<8x16xf32>, vector<8x16xf32>, vector<8x16xf32>, vector<8x16xf32>, vector<8x16xf32>, vector<8x16xf32>, vector<8x16xf32>, vector<8x16xf32>, vector<8x16xf32>, vector<8x16xf32>, vector<8x16xf32> -> vector<128x16xf32>
    %cst_6 = arith.constant 0.000000e+00 : f32
    %25 = vector.broadcast %cst_6 : f32 to vector<8x16xf32>
    %26 = vector.extract_strided_slice %24 {offsets = [0, 0], sizes = [120, 16], strides = [1, 1]} : vector<128x16xf32> to vector<120x16xf32>
    %27 = tpu.concatenate %25, %26 in 0 : vector<8x16xf32>, vector<120x16xf32> -> vector<128x16xf32>
    %28 = vector.extract_strided_slice %24 {offsets = [8, 0], sizes = [120, 16], strides = [1, 1]} : vector<128x16xf32> to vector<120x16xf32>
    %29 = tpu.concatenate %28, %25 in 0 : vector<120x16xf32>, vector<8x16xf32> -> vector<128x16xf32>
    %30 = tpu.concatenate %27, %24, %29 in 1 : vector<128x16xf32>, vector<128x16xf32>, vector<128x16xf32> -> vector<128x48xf32>
    %c0_7 = arith.constant 0 : index
    %c0_8 = arith.constant 0 : index
    %31 = vector.load %arg4[%c0_7, %c0_8] : memref<48x32xf32, #tpu.memory_space<vmem>>, vector<48x32xf32>
    %cst_9 = arith.constant dense<0.000000e+00> : vector<128x32xf32>
    %32 = tpu.matmul %30, %31, %cst_9 {dimension_numbers = #tpu.dot_dimension_numbers<[1], [0], [0], [1], [0, 0, 1, 1], [], []>} : vector<128x48xf32>, vector<48x32xf32>, vector<128x32xf32> -> vector<128x32xf32>
    %c0_10 = arith.constant 0 : index
    %c0_11 = arith.constant 0 : index
    %33 = vector.load %arg5[%c0_10, %c0_11] : memref<1x32xf32, #tpu.memory_space<vmem>>, vector<1x32xf32>
    %34 = vector.broadcast %33 : vector<1x32xf32> to vector<128x32xf32>
    %35 = arith.addf %32, %34 : vector<128x32xf32>
    %cst_12 = arith.constant 0.000000e+00 : f32
    %36 = vector.broadcast %cst_12 : f32 to vector<128x32xf32>
    %37 = arith.maximumf %35, %36 : vector<128x32xf32>
    %38 = vector.shape_cast %37 : vector<128x32xf32> to vector<8x16x32xf32>
    %39 = vector.extract_strided_slice %38 {offsets = [0, 0, 0], sizes = [8, 8, 32], strides = [1, 1, 1]} : vector<8x16x32xf32> to vector<8x8x32xf32>
    %40 = vector.extract_strided_slice %38 {offsets = [0, 8, 0], sizes = [8, 8, 32], strides = [1, 1, 1]} : vector<8x16x32xf32> to vector<8x8x32xf32>
    %41 = arith.maximumf %39, %40 : vector<8x8x32xf32>
    %42 = vector.shape_cast %41 : vector<8x8x32xf32> to vector<64x32xf32>
    %cst_13 = arith.constant 0.000000e+00 : f32
    %43 = vector.broadcast %cst_13 : f32 to vector<8x32xf32>
    %44 = vector.extract_strided_slice %42 {offsets = [0, 0], sizes = [56, 32], strides = [1, 1]} : vector<64x32xf32> to vector<56x32xf32>
    %45 = tpu.concatenate %43, %44 in 0 : vector<8x32xf32>, vector<56x32xf32> -> vector<64x32xf32>
    %46 = vector.extract_strided_slice %42 {offsets = [8, 0], sizes = [56, 32], strides = [1, 1]} : vector<64x32xf32> to vector<56x32xf32>
    %47 = tpu.concatenate %46, %43 in 0 : vector<56x32xf32>, vector<8x32xf32> -> vector<64x32xf32>
    %48 = tpu.concatenate %45, %42, %47 in 1 : vector<64x32xf32>, vector<64x32xf32>, vector<64x32xf32> -> vector<64x96xf32>
    %c0_14 = arith.constant 0 : index
    %c0_15 = arith.constant 0 : index
    %49 = vector.load %arg6[%c0_14, %c0_15] : memref<96x32xf32, #tpu.memory_space<vmem>>, vector<96x32xf32>
    %cst_16 = arith.constant dense<0.000000e+00> : vector<64x32xf32>
    %50 = tpu.matmul %48, %49, %cst_16 {dimension_numbers = #tpu.dot_dimension_numbers<[1], [0], [0], [1], [0, 0, 1, 1], [], []>} : vector<64x96xf32>, vector<96x32xf32>, vector<64x32xf32> -> vector<64x32xf32>
    %c0_17 = arith.constant 0 : index
    %c0_18 = arith.constant 0 : index
    %51 = vector.load %arg7[%c0_17, %c0_18] : memref<1x32xf32, #tpu.memory_space<vmem>>, vector<1x32xf32>
    %52 = vector.broadcast %51 : vector<1x32xf32> to vector<64x32xf32>
    %53 = arith.addf %50, %52 : vector<64x32xf32>
    %cst_19 = arith.constant 0.000000e+00 : f32
    %54 = vector.broadcast %cst_19 : f32 to vector<64x32xf32>
    %55 = arith.maximumf %53, %54 : vector<64x32xf32>
    %56 = vector.shape_cast %55 : vector<64x32xf32> to vector<4x16x32xf32>
    %57 = vector.extract_strided_slice %56 {offsets = [0, 0, 0], sizes = [4, 8, 32], strides = [1, 1, 1]} : vector<4x16x32xf32> to vector<4x8x32xf32>
    %58 = vector.extract_strided_slice %56 {offsets = [0, 8, 0], sizes = [4, 8, 32], strides = [1, 1, 1]} : vector<4x16x32xf32> to vector<4x8x32xf32>
    %59 = arith.maximumf %57, %58 : vector<4x8x32xf32>
    %60 = vector.shape_cast %59 : vector<4x8x32xf32> to vector<32x32xf32>
    %c0_20 = arith.constant 0 : index
    %c0_21 = arith.constant 0 : index
    %61 = vector.load %arg8[%c0_20, %c0_21] : memref<32x96xf32, #tpu.memory_space<vmem>>, vector<32x96xf32>
    %cst_22 = arith.constant dense<0.000000e+00> : vector<32x96xf32>
    %62 = tpu.matmul %60, %61, %cst_22 {dimension_numbers = #tpu.dot_dimension_numbers<[1], [0], [0], [1], [0, 0, 1, 1], [], []>} : vector<32x32xf32>, vector<32x96xf32>, vector<32x96xf32> -> vector<32x96xf32>
    %c0_23 = arith.constant 0 : index
    %c0_24 = arith.constant 0 : index
    %63 = vector.load %arg10[%c0_23, %c0_24] : memref<1x96xf32, #tpu.memory_space<vmem>>, vector<1x96xf32>
    %64 = vector.broadcast %63 : vector<1x96xf32> to vector<32x96xf32>
    %65 = arith.addf %62, %64 : vector<32x96xf32>
    %c0_25 = arith.constant 0 : index
    %c0_26 = arith.constant 0 : index
    %66 = vector.load %arg11[%c0_25, %c0_26] : memref<1x96xf32, #tpu.memory_space<vmem>>, vector<1x96xf32>
    %67 = vector.extract_strided_slice %65 {offsets = [0, 0], sizes = [32, 64], strides = [1, 1]} : vector<32x96xf32> to vector<32x64xf32>
    %68 = vector.extract_strided_slice %66 {offsets = [0, 0], sizes = [1, 64], strides = [1, 1]} : vector<1x96xf32> to vector<1x64xf32>
    %69 = vector.broadcast %68 : vector<1x64xf32> to vector<32x64xf32>
    %70 = arith.addf %67, %69 : vector<32x64xf32>
    %71 = vector.extract_strided_slice %65 {offsets = [0, 64], sizes = [32, 32], strides = [1, 1]} : vector<32x96xf32> to vector<32x32xf32>
    %72 = vector.extract_strided_slice %66 {offsets = [0, 64], sizes = [1, 32], strides = [1, 1]} : vector<1x96xf32> to vector<1x32xf32>
    %73 = vector.shape_cast %72 : vector<1x32xf32> to vector<1x32xf32>
    %74 = vector.broadcast %73 : vector<1x32xf32> to vector<8x32xf32>
    %c0_27 = arith.constant 0 : index
    %c0_28 = arith.constant 0 : index
    %75 = vector.load %arg9[%c0_27, %c0_28] : memref<32x96xf32, #tpu.memory_space<vmem>>, vector<32x96xf32>
    %76 = vector.extract_strided_slice %70 {offsets = [0, 0], sizes = [8, 64], strides = [1, 1]} : vector<32x64xf32> to vector<8x64xf32>
    %77 = arith.negf %76 : vector<8x64xf32>
    %78 = math.exp %77 : vector<8x64xf32>
    %cst_29 = arith.constant 1.000000e+00 : f32
    %79 = vector.broadcast %cst_29 : f32 to vector<8x64xf32>
    %80 = arith.addf %79, %78 : vector<8x64xf32>
    %81 = arith.divf %79, %80 : vector<8x64xf32>
    %82 = vector.extract_strided_slice %81 {offsets = [0, 0], sizes = [8, 32], strides = [1, 1]} : vector<8x64xf32> to vector<8x32xf32>
    %83 = vector.extract_strided_slice %81 {offsets = [0, 32], sizes = [8, 32], strides = [1, 1]} : vector<8x64xf32> to vector<8x32xf32>
    %84 = vector.extract_strided_slice %71 {offsets = [0, 0], sizes = [8, 32], strides = [1, 1]} : vector<32x32xf32> to vector<8x32xf32>
    %85 = arith.mulf %82, %74 : vector<8x32xf32>
    %86 = arith.addf %84, %85 : vector<8x32xf32>
    %87 = math.tanh %86 : vector<8x32xf32>
    %cst_30 = arith.constant 1.000000e+00 : f32
    %88 = vector.broadcast %cst_30 : f32 to vector<8x32xf32>
    %89 = arith.subf %88, %83 : vector<8x32xf32>
    %90 = arith.mulf %89, %87 : vector<8x32xf32>
    %cst_31 = arith.constant dense<0.000000e+00> : vector<8x96xf32>
    %91 = tpu.matmul %90, %75, %cst_31 {dimension_numbers = #tpu.dot_dimension_numbers<[1], [0], [0], [1], [0, 0, 1, 1], [], []>} : vector<8x32xf32>, vector<32x96xf32>, vector<8x96xf32> -> vector<8x96xf32>
    %92 = vector.extract_strided_slice %70 {offsets = [8, 0], sizes = [8, 64], strides = [1, 1]} : vector<32x64xf32> to vector<8x64xf32>
    %93 = vector.extract_strided_slice %91 {offsets = [0, 0], sizes = [8, 64], strides = [1, 1]} : vector<8x96xf32> to vector<8x64xf32>
    %94 = arith.addf %92, %93 : vector<8x64xf32>
    %95 = arith.negf %94 : vector<8x64xf32>
    %96 = math.exp %95 : vector<8x64xf32>
    %cst_32 = arith.constant 1.000000e+00 : f32
    %97 = vector.broadcast %cst_32 : f32 to vector<8x64xf32>
    %98 = arith.addf %97, %96 : vector<8x64xf32>
    %99 = arith.divf %97, %98 : vector<8x64xf32>
    %100 = vector.extract_strided_slice %99 {offsets = [0, 0], sizes = [8, 32], strides = [1, 1]} : vector<8x64xf32> to vector<8x32xf32>
    %101 = vector.extract_strided_slice %99 {offsets = [0, 32], sizes = [8, 32], strides = [1, 1]} : vector<8x64xf32> to vector<8x32xf32>
    %102 = vector.extract_strided_slice %71 {offsets = [8, 0], sizes = [8, 32], strides = [1, 1]} : vector<32x32xf32> to vector<8x32xf32>
    %103 = vector.extract_strided_slice %91 {offsets = [0, 64], sizes = [8, 32], strides = [1, 1]} : vector<8x96xf32> to vector<8x32xf32>
    %104 = arith.addf %103, %74 : vector<8x32xf32>
    %105 = arith.mulf %100, %104 : vector<8x32xf32>
    %106 = arith.addf %102, %105 : vector<8x32xf32>
    %107 = math.tanh %106 : vector<8x32xf32>
    %cst_33 = arith.constant 1.000000e+00 : f32
    %108 = vector.broadcast %cst_33 : f32 to vector<8x32xf32>
    %109 = arith.subf %108, %101 : vector<8x32xf32>
    %110 = arith.mulf %109, %107 : vector<8x32xf32>
    %111 = arith.mulf %101, %90 : vector<8x32xf32>
    %112 = arith.addf %110, %111 : vector<8x32xf32>
    %cst_34 = arith.constant dense<0.000000e+00> : vector<8x96xf32>
    %113 = tpu.matmul %112, %75, %cst_34 {dimension_numbers = #tpu.dot_dimension_numbers<[1], [0], [0], [1], [0, 0, 1, 1], [], []>} : vector<8x32xf32>, vector<32x96xf32>, vector<8x96xf32> -> vector<8x96xf32>
    %114 = vector.extract_strided_slice %70 {offsets = [16, 0], sizes = [8, 64], strides = [1, 1]} : vector<32x64xf32> to vector<8x64xf32>
    %115 = vector.extract_strided_slice %113 {offsets = [0, 0], sizes = [8, 64], strides = [1, 1]} : vector<8x96xf32> to vector<8x64xf32>
    %116 = arith.addf %114, %115 : vector<8x64xf32>
    %117 = arith.negf %116 : vector<8x64xf32>
    %118 = math.exp %117 : vector<8x64xf32>
    %cst_35 = arith.constant 1.000000e+00 : f32
    %119 = vector.broadcast %cst_35 : f32 to vector<8x64xf32>
    %120 = arith.addf %119, %118 : vector<8x64xf32>
    %121 = arith.divf %119, %120 : vector<8x64xf32>
    %122 = vector.extract_strided_slice %121 {offsets = [0, 0], sizes = [8, 32], strides = [1, 1]} : vector<8x64xf32> to vector<8x32xf32>
    %123 = vector.extract_strided_slice %121 {offsets = [0, 32], sizes = [8, 32], strides = [1, 1]} : vector<8x64xf32> to vector<8x32xf32>
    %124 = vector.extract_strided_slice %71 {offsets = [16, 0], sizes = [8, 32], strides = [1, 1]} : vector<32x32xf32> to vector<8x32xf32>
    %125 = vector.extract_strided_slice %113 {offsets = [0, 64], sizes = [8, 32], strides = [1, 1]} : vector<8x96xf32> to vector<8x32xf32>
    %126 = arith.addf %125, %74 : vector<8x32xf32>
    %127 = arith.mulf %122, %126 : vector<8x32xf32>
    %128 = arith.addf %124, %127 : vector<8x32xf32>
    %129 = math.tanh %128 : vector<8x32xf32>
    %cst_36 = arith.constant 1.000000e+00 : f32
    %130 = vector.broadcast %cst_36 : f32 to vector<8x32xf32>
    %131 = arith.subf %130, %123 : vector<8x32xf32>
    %132 = arith.mulf %131, %129 : vector<8x32xf32>
    %133 = arith.mulf %123, %112 : vector<8x32xf32>
    %134 = arith.addf %132, %133 : vector<8x32xf32>
    %cst_37 = arith.constant dense<0.000000e+00> : vector<8x96xf32>
    %135 = tpu.matmul %134, %75, %cst_37 {dimension_numbers = #tpu.dot_dimension_numbers<[1], [0], [0], [1], [0, 0, 1, 1], [], []>} : vector<8x32xf32>, vector<32x96xf32>, vector<8x96xf32> -> vector<8x96xf32>
    %136 = vector.extract_strided_slice %70 {offsets = [24, 0], sizes = [8, 64], strides = [1, 1]} : vector<32x64xf32> to vector<8x64xf32>
    %137 = vector.extract_strided_slice %135 {offsets = [0, 0], sizes = [8, 64], strides = [1, 1]} : vector<8x96xf32> to vector<8x64xf32>
    %138 = arith.addf %136, %137 : vector<8x64xf32>
    %139 = arith.negf %138 : vector<8x64xf32>
    %140 = math.exp %139 : vector<8x64xf32>
    %cst_38 = arith.constant 1.000000e+00 : f32
    %141 = vector.broadcast %cst_38 : f32 to vector<8x64xf32>
    %142 = arith.addf %141, %140 : vector<8x64xf32>
    %143 = arith.divf %141, %142 : vector<8x64xf32>
    %144 = vector.extract_strided_slice %143 {offsets = [0, 0], sizes = [8, 32], strides = [1, 1]} : vector<8x64xf32> to vector<8x32xf32>
    %145 = vector.extract_strided_slice %143 {offsets = [0, 32], sizes = [8, 32], strides = [1, 1]} : vector<8x64xf32> to vector<8x32xf32>
    %146 = vector.extract_strided_slice %71 {offsets = [24, 0], sizes = [8, 32], strides = [1, 1]} : vector<32x32xf32> to vector<8x32xf32>
    %147 = vector.extract_strided_slice %135 {offsets = [0, 64], sizes = [8, 32], strides = [1, 1]} : vector<8x96xf32> to vector<8x32xf32>
    %148 = arith.addf %147, %74 : vector<8x32xf32>
    %149 = arith.mulf %144, %148 : vector<8x32xf32>
    %150 = arith.addf %146, %149 : vector<8x32xf32>
    %151 = math.tanh %150 : vector<8x32xf32>
    %cst_39 = arith.constant 1.000000e+00 : f32
    %152 = vector.broadcast %cst_39 : f32 to vector<8x32xf32>
    %153 = arith.subf %152, %145 : vector<8x32xf32>
    %154 = arith.mulf %153, %151 : vector<8x32xf32>
    %155 = arith.mulf %145, %134 : vector<8x32xf32>
    %156 = arith.addf %154, %155 : vector<8x32xf32>
    %c0_40 = arith.constant 0 : index
    %c0_41 = arith.constant 0 : index
    %157 = vector.load %arg12[%c0_40, %c0_41] : memref<32x128xf32, #tpu.memory_space<vmem>>, vector<32x128xf32>
    %cst_42 = arith.constant dense<0.000000e+00> : vector<8x128xf32>
    %158 = tpu.matmul %156, %157, %cst_42 {dimension_numbers = #tpu.dot_dimension_numbers<[1], [0], [0], [1], [0, 0, 1, 1], [], []>} : vector<8x32xf32>, vector<32x128xf32>, vector<8x128xf32> -> vector<8x128xf32>
    %c0_43 = arith.constant 0 : index
    %c0_44 = arith.constant 0 : index
    %159 = vector.load %arg13[%c0_43, %c0_44] : memref<1x128xf32, #tpu.memory_space<vmem>>, vector<1x128xf32>
    %160 = vector.broadcast %159 : vector<1x128xf32> to vector<8x128xf32>
    %161 = arith.addf %158, %160 : vector<8x128xf32>
    %c0_45 = arith.constant 0 : index
    %c0_46 = arith.constant 0 : index
    %162 = vector.load %arg14[%c0_45, %c0_46] : memref<8x128xf32, #tpu.memory_space<vmem>>, vector<8x128xf32>
    tpu.vector_store %arg14[%c0_45, %c0_46], %161 {strides = array<i32>} : memref<8x128xf32, #tpu.memory_space<vmem>>, vector<8x128xf32>,
    return
  }
  func.func @transform_0(%arg0: i32) -> (i32, i32) {
    %c0_i32 = arith.constant 0 : i32
    %c0_i32_0 = arith.constant 0 : i32
    return %arg0, %c0_i32 : i32, i32
  }
  func.func @transform_1(%arg0: i32) -> (i32, i32) {
    %c0_i32 = arith.constant 0 : i32
    %c0_i32_0 = arith.constant 0 : i32
    %c0_i32_1 = arith.constant 0 : i32
    return %c0_i32, %c0_i32_0 : i32, i32
  }
  func.func @transform_2(%arg0: i32) -> (i32, i32) {
    %c0_i32 = arith.constant 0 : i32
    %c0_i32_0 = arith.constant 0 : i32
    %c0_i32_1 = arith.constant 0 : i32
    return %c0_i32, %c0_i32_0 : i32, i32
  }
  func.func @transform_3(%arg0: i32) -> (i32, i32) {
    %c0_i32 = arith.constant 0 : i32
    %c0_i32_0 = arith.constant 0 : i32
    %c0_i32_1 = arith.constant 0 : i32
    return %c0_i32, %c0_i32_0 : i32, i32
  }
  func.func @transform_4(%arg0: i32) -> (i32, i32) {
    %c0_i32 = arith.constant 0 : i32
    %c0_i32_0 = arith.constant 0 : i32
    %c0_i32_1 = arith.constant 0 : i32
    return %c0_i32, %c0_i32_0 : i32, i32
  }
  func.func @transform_5(%arg0: i32) -> (i32, i32) {
    %c0_i32 = arith.constant 0 : i32
    %c0_i32_0 = arith.constant 0 : i32
    %c0_i32_1 = arith.constant 0 : i32
    return %c0_i32, %c0_i32_0 : i32, i32
  }
  func.func @transform_6(%arg0: i32) -> (i32, i32) {
    %c0_i32 = arith.constant 0 : i32
    %c0_i32_0 = arith.constant 0 : i32
    %c0_i32_1 = arith.constant 0 : i32
    return %c0_i32, %c0_i32_0 : i32, i32
  }
  func.func @transform_7(%arg0: i32) -> (i32, i32) {
    %c0_i32 = arith.constant 0 : i32
    %c0_i32_0 = arith.constant 0 : i32
    %c0_i32_1 = arith.constant 0 : i32
    return %c0_i32, %c0_i32_0 : i32, i32
  }
  func.func @transform_8(%arg0: i32) -> (i32, i32) {
    %c0_i32 = arith.constant 0 : i32
    %c0_i32_0 = arith.constant 0 : i32
    %c0_i32_1 = arith.constant 0 : i32
    return %c0_i32, %c0_i32_0 : i32, i32
  }
  func.func @transform_9(%arg0: i32) -> (i32, i32) {
    %c0_i32 = arith.constant 0 : i32
    %c0_i32_0 = arith.constant 0 : i32
    %c0_i32_1 = arith.constant 0 : i32
    return %c0_i32, %c0_i32_0 : i32, i32
  }
  func.func @transform_10(%arg0: i32) -> (i32, i32) {
    %c0_i32 = arith.constant 0 : i32
    %c0_i32_0 = arith.constant 0 : i32
    %c0_i32_1 = arith.constant 0 : i32
    return %c0_i32, %c0_i32_0 : i32, i32
  }
  func.func @transform_11(%arg0: i32) -> (i32, i32) {
    %c0_i32 = arith.constant 0 : i32
    %c0_i32_0 = arith.constant 0 : i32
    %c0_i32_1 = arith.constant 0 : i32
    return %c0_i32, %c0_i32_0 : i32, i32
  }
  func.func @transform_12(%arg0: i32) -> (i32, i32) {
    %c0_i32 = arith.constant 0 : i32
    %c0_i32_0 = arith.constant 0 : i32
    %c0_i32_1 = arith.constant 0 : i32
    return %c0_i32, %c0_i32_0 : i32, i32
  }
  func.func @transform_13(%arg0: i32) -> (i32, i32) {
    %c0_i32 = arith.constant 0 : i32
    %c0_i32_0 = arith.constant 0 : i32
    return %arg0, %c0_i32 : i32, i32
  }
}

</mosaic_0001>

<bundles_post_ra>
// kernel: tpu_custom_call.1
= control target key start
LH: loop header
LB: loop body
LE: loop exit
PB: predicated region body
PF: predicated region fallthrough
CT: control target
= control target key end

     0   :  { %18 = vsyncpa [#allocation3], 0  ;;  %s2331_s0 = inlined_call_operand.hbm [shape: f32[8,48], index: 0, kind: input, shape index: {}]   ;;  %s2332_s1 = inlined_call_operand.vmem [shape: f32[48,256], index: 1, kind: input, shape index: {}]   ;;  %s2333_s2 = inlined_call_operand.vmem [shape: f32[1,256], index: 2, kind: input, shape index: {}]   ;;  %s2334_s3 = inlined_call_operand.vmem [shape: f32[48,32], index: 3, kind: input, shape index: {}]   ;;  %s2335_s4 = inlined_call_operand.hbm [shape: f32[1,32], index: 4, kind: input, shape index: {}]   ;;  %s2336_s5 = inlined_call_operand.vmem [shape: f32[96,32], index: 5, kind: input, shape index: {}]   ;;  %s2337_s6 = inlined_call_operand.vmem [shape: f32[1,32], index: 6, kind: input, shape index: {}]   ;;  %s2338_s7 = inlined_call_operand.vmem [shape: f32[32,96], index: 7, kind: input, shape index: {}]   ;;  %s2339_s8 = inlined_call_operand.vmem [shape: f32[32,96], index: 8, kind: input, shape index: {}]   ;;  %s2340_s9 = inlined_call_operand.vmem [shape: f32[1,96], index: 9, kind: input, shape index: {}]   ;;  %s2341_s10 = inlined_call_operand.vmem [shape: f32[1,96], index: 10, kind: input, shape index: {}]   ;;  %s2342_s11 = inlined_call_operand.vmem [shape: f32[32,128], index: 11, kind: input, shape index: {}]   ;;  %s2343_s12 = inlined_call_operand.vmem [shape: f32[1,128], index: 12, kind: input, shape index: {}]   ;;  %s2344_s13 = inlined_call_operand.hbm [shape: f32[8,128], index: 13, kind: output, shape index: {}]  }
   0x1   :  { %19 = vsyncpa [#allocation6], 0 }
   0x2   :  { %20 = vsyncpa [#allocation4], 0  ;;  %s1786_s25 = smov [#allocation2]   ;;  %s1787_s27 = smov [#allocation5]  }
   0x3   :  { %s27_s26 = sshll.u32 %s1786_s25, 4  ;;  %s43_s28 = sshll.u32 %s1787_s27, 4  ;;  %s28_s26 = int_to_ptr.vmem [resolvable:$true] %s27_s26  ;;  %s44_s28 = int_to_ptr.vmem [resolvable:$true] %s43_s28 }
   0x4   :  { %s1714_s14 = scalar_lea.hbm %s2331_s0, 128 }
   0x5   :  { %p1715_p0 = scmp.ne.s32.totalorder %s2331_s0, %s1714_s14  ;;  %p1718_p1 = scmp.lt.u32.totalorder %s1714_s14, %s2331_s0 }
   0x7   :  { %p1720_p2 = pnand %p1718_p1, %p1715_p0 }
   0x9   :  { %1723 = shalt.err (!%p1720_p2)
}
   0xa   :  { %s1724_s19 = scalar_lea.vmem %s28_s26, 128  ;;  %p1729_p4 = scmp.lt.s32.totalorder %s28_s26, %s28_s26 }
   0xb   :  { %p1725_p3 = scmp.ne.s32.totalorder %s28_s26, %s1724_s19  ;;  %p1730_p5 = scmp.lt.s32.totalorder %s1724_s19, %s1724_s19 }
   0xd   :  { %p1731_p6 = por %p1730_p5, %p1729_p4 }
   0xf   :  { %p1732_p7 = pnand %p1731_p6, %p1725_p3 }
  0x11   :  { %1735 = shalt.err (!%p1732_p7)
}
  0x12   :  { %30 = dma.hbm_to_vmem [thread:$0]  %s2331_s0, 128, %s28_s26, [#allocation3]  }
  0x13   :  { %s1736_s24 = scalar_lea.hbm %s2335_s4, 16 }
  0x14   :  { %p1737_p8 = scmp.ne.s32.totalorder %s2335_s4, %s1736_s24  ;;  %p1740_p9 = scmp.lt.u32.totalorder %s1736_s24, %s2335_s4 }
  0x16   :  { %p1742_p10 = pnand %p1740_p9, %p1737_p8 }
  0x18   :  { %1745 = shalt.err (!%p1742_p10)
}
  0x19   :  { %s1746_s14 = scalar_lea.vmem %s44_s28, 16  ;;  %s1750_s15 = scalar_lea.vmem %s44_s28, 32 }
  0x1a   :  { %p1747_p11 = scmp.ne.s32.totalorder %s44_s28, %s1746_s14  ;;  %p1751_p12 = scmp.lt.s32.totalorder %s44_s28, %s44_s28 }
  0x1b   :  { %p1752_p13 = scmp.lt.s32.totalorder %s1750_s15, %s1746_s14 }
  0x1d   :  { %p1753_p0 = por %p1752_p13, %p1751_p12 }
  0x1f   :  { %p1754_p1 = pnand %p1753_p0, %p1747_p11 }
  0x21   :  { %1757 = shalt.err (!%p1754_p1)
}
  0x22   :  { %46 = dma.hbm_to_vmem [thread:$0]  %s2335_s4, 16, %s44_s28, [#allocation6]  }
  0x23   :  { %1780 = dma.done.wait [#allocation3], 128  }
  0x24   :  { %1781 = vsyncadd [#allocation3], 4294967168 }
  0x25   :  { %1782 = dma.done.wait [#allocation6], 16  }
  0x26   :  { %1783 = vsyncadd [#allocation6], 4294967280  ;;  %v1788_v0 = vmov 0.0   ;;  %v71_v1 = vld [vmem:[%s2332_s1 + $0x8] sm:$0xff]  ;;  %v73_v2 = vld [vmem:[%s2332_s1 + $0x18] sm:$0xff]  ;;  %vm94_vm0 = vcmask 392192   ;;  %v84_v20 = vlaneseq }
  0x27   :  { %162 = vmatprep.mubr.f32.mxu0 %v1788_v0  ;;  %v70_v3 = vld [vmem:[%s2332_s1] sm:$0xff]  ;;  %v1597_v4 = vpack.c.bf16 %v73_v2, %v71_v1  ;;  %v72_v5 = vld [vmem:[%s2332_s1 + $0x10] sm:$0xff]  ;;  %v75_v6 = vld [vmem:[%s2332_s1 + $0x28] sm:$0xff]  ;;  %s1790_s28 = smov 112   ;;  %s1791_s22 = smov 64   ;;  %vm303_vm1 = vcmask 130048  }
  0x28   :  { %v77_v7 = vld [vmem:[%s2332_s1 + $0x38] sm:$0xff]  ;;  %v1599_v8 = vpack.c.bf16 %v72_v5, %v70_v3  ;;  %v74_v10 = vld [vmem:[%s2332_s1 + $0x20] sm:$0xff]  ;;  %v76_v11 = vld [vmem:[%s2332_s1 + $0x30] sm:$0xff]  ;;  %v85_v21 = vshrl.u32 %v84_v20, 7  ;;  %s1793_s23 = smov 32   ;;  %s1794_s24 = smov 48  }
  0x29   :  { %v1601_v9 = vpack.c.bf16 %v77_v7, %v75_v6  ;;  %v79_v12 = vld [vmem:[%s2332_s1 + $0x48] sm:$0xff]  ;;  %1598 = vmatprep.subr.bf16.mxu0 %v1597_v4  ;;  %v81_v13 = vld [vmem:[%s2332_s1 + $0x58] sm:$0xff]  ;;  %v1603_v14 = vpack.c.bf16 %v76_v11, %v74_v10  ;;  %v78_v16 = vld [vmem:[%s2332_s1 + $0x40] sm:$0xff]  ;;  %s1795_s25 = smov 16   ;;  %vm320_vm2 = vcmask 261120   ;;  %vm631_vm3 = vcmask 523264  }
  0x2a   :  { %1600 = vmatpush1.bf16.msra.mxu0 %v1599_v8  ;;  %v1605_v15 = vpack.c.bf16 %v81_v13, %v79_v12  ;;  %v80_v17 = vld [vmem:[%s2332_s1 + $0x50] sm:$0xff]  ;;  %v69_v19 = vld [vmem:[#allocation2] sm:$0xff]  ;;  %v86_v22 = vsub.s32 0, %v85_v21  ;;  %v90_v29 = vsub.s32 1, %v85_v21  ;;  %s1789_s1 = smov 80   ;;  %v338_v34 = vld [vmem:[%s2334_s3 + $0x8] sm:$0xff] }
  0x2b   :  { %1602 = vmatprep.subr.bf16.mxu0 %v1601_v9  ;;  %v1607_v18 = vpack.c.bf16 %v80_v17, %v78_v16  ;;  %v82_v23 = vld [vmem:[%s2333_s2] sm:$0x3]  ;;  %s1792_s2 = smov 96   ;;  %v339_v35 = vld [vmem:[%s2334_s3 + $0x10] sm:$0xff]  ;;  %v340_v37 = vld [vmem:[%s2334_s3 + $0x18] sm:$0xff]  ;;  %vm659_vm4 = vcmask 785408  }
  0x2c   :  { %v87_v24 = vrot.slane %v82_v23, %v86_v22  ;;  %v91_v30 = vrot.slane %v82_v23, %v90_v29  ;;  %v337_v33 = vld [vmem:[%s2334_s3] sm:$0xff]  ;;  %v1613_v38 = vpack.c.bf16 %v340_v37, %v339_v35  ;;  %v342_v40 = vld [vmem:[%s2334_s3 + $0x28] sm:$0xff]  ;;  %v642_v29 = vld [vmem:[%s2336_s5 + $0x10] sm:$0xff]  ;;  %vm1797_vm5 = vmmov 0   ;;  %s1798_s0 = smov [#allocation7]  }
  0x2d   :  { %v1609_v36 = vpack.c.bf16 %v338_v34, %v337_v33  ;;  %v341_v39 = vld [vmem:[%s2334_s3 + $0x20] sm:$0xff]  ;;  %v645_v35 = vld [vmem:[%s2336_s5 + $0x28] sm:$0xff]  ;;  %v646_v37 = vld [vmem:[%s2336_s5 + $0x30] sm:$0xff]  ;;  %s1345_s26 = sshll.u32 %s1798_s0, 4  ;;  %s1346_s26 = int_to_ptr.vmem [resolvable:$true] %s1345_s26 }
  0x2e   :  { %1604 = vmatpush1.bf16.msra.mxu0 %v1603_v14  ;;  %v1617_v41 = vpack.c.bf16 %v342_v40, %v341_v39  ;;  %v644_v34 = vld [vmem:[%s2336_s5 + $0x20] sm:$0xff]  ;;  %v2062_v40 = vld [vmem:[#allocation5] ss:$0 sm:$0xff]  ;;  %s1758_s16 = scalar_lea.vmem %s1346_s26, 128  ;;  %p1763_p3 = scmp.lt.s32.totalorder %s1346_s26, %s1346_s26 }
  0x2f   :  { %1606 = vmatprep.subr.bf16.mxu0 %v1605_v15  ;;  %1610 = vmatprep.subr.bf16.mxu1 %v1609_v36  ;;  %p1759_p2 = scmp.ne.s32.totalorder %s1346_s26, %s1758_s16  ;;  %p1764_p4 = scmp.lt.s32.totalorder %s1758_s16, %s1758_s16 }
  0x30   :  { %1612 = vmatpush3.bf16.msra.mxu1 %v1609_v36  ;;  %v1629_v36 = vpack.c.bf16 %v645_v35, %v644_v34 }
  0x31   :  { %1614 = vmatprep.subr.bf16.mxu1 %v1613_v38  ;;  %p1765_p5 = por %p1764_p4, %p1763_p3 }
  0x32   :  { %1608 = vmatpush1.bf16.msra.mxu0 %v1607_v18 }
  0x33   :  { %p1766_p6 = pnand %p1765_p5, %p1759_p2 }
  0x34   :  { %1616 = vmatpush3.bf16.msra.mxu1 %v1613_v38  ;;  %v647_v38 = vld [vmem:[%s2336_s5 + $0x38] sm:$0xff] }
  0x35   :  { %1355 = vmatmul.mubr.msk.f32.vlgmr.msra.gmra.mrb[0].mxu0 %vm94_vm0, %v69_v19  ;;  %1618 = vmatprep.subr.bf16.mxu1 %v1617_v41  ;;  %v1633_v39 = vpack.c.bf16 %v647_v38, %v646_v37 }
  0x38   :  { %1620 = vmatpush3.bf16.msra.mxu1 %v1617_v41 }
 0x108   :  { %v164_v25 = vpop.f32.mrb[0].mxu0 }
 0x109   :  { %v165_v26 = vadd.f32 %v164_v25, %v87_v24  ;;  %v166_v27 = vpop.f32.mrb[1].mxu0 }
 0x10a   :  { %v167_v31 = vadd.f32 %v166_v27, %v91_v30  ;;  %v640_v27 = vld [vmem:[%s2336_s5] sm:$0xff] }
 0x10b   :  { %v1934_v28 = vmax.f32 %v165_v26, 0.0 }
 0x10c   :  { %v1947_v32 = vmax.f32 %v167_v31, 0.0  ;;  %v643_v31 = vld [vmem:[%s2336_s5 + $0x18] sm:$0xff] }
 0x10d   :  { %178 = vrot.lane.b32.xlu1 %v1934_v28, %s1789_s1  ;;  %172 = vrot.lane.b32.xlu0 %v1934_v28, %s1790_s28  ;;  %v1625_v33 = vpack.c.bf16 %v643_v31, %v642_v29 }
 0x111   :  { %181 = vrot.lane.b32.xlu1 %v1934_v28, %s1791_s22  ;;  %175 = vrot.lane.b32.xlu0 %v1934_v28, %s1792_s2 }
 0x115   :  { %187 = vrot.lane.b32.xlu1 %v1934_v28, %s1793_s23  ;;  %184 = vrot.lane.b32.xlu0 %v1934_v28, %s1794_s24 }
 0x119   :  { %194 = vrot.lane.b32.xlu1 %v1947_v32, %s1790_s28  ;;  %190 = vrot.lane.b32.xlu0 %v1934_v28, %s1795_s25 }
 0x11d   :  { %209 = vrot.lane.b32.xlu1 %v1947_v32, %s1793_s23  ;;  %197 = vrot.lane.b32.xlu0 %v1947_v32, %s1792_s2 }
 0x121   :  { %212 = vrot.lane.b32.xlu0 %v1947_v32, %s1795_s25 }
 0x17f   :  { %v173_v42 = vpop.permute.xlu0 %172  ;;  %v179_v44 = vpop.permute.xlu1 %178 }
 0x180   :  { %258 = vrot.lane.b32.xlu0 %v173_v42, %s1793_s23  ;;  %214 = vrot.lane.b32.xlu1 %v173_v42, %s1795_s25 }
 0x183   :  { %v176_v43 = vpop.permute.xlu0 %175  ;;  %v182_v45 = vpop.permute.xlu1 %181 }
 0x184   :  { %216 = vrot.lane.b32.xlu0 %v176_v43, %s1795_s25  ;;  %260 = vrot.lane.b32.xlu1 %v176_v43, %s1793_s23 }
 0x187   :  { %v185_v46 = vpop.permute.xlu0 %184  ;;  %v188_v47 = vpop.permute.xlu1 %187 }
 0x188   :  { %262 = vrot.lane.b32.xlu0 %v179_v44, %s1793_s23  ;;  %218 = vrot.lane.b32.xlu1 %v179_v44, %s1795_s25 }
 0x18b   :  { %v191_v48 = vpop.permute.xlu0 %190  ;;  %v1990_v49 = vpop.permute.xlu1 %194 }
 0x18c   :  { %220 = vrot.lane.b32.xlu0 %v182_v45, %s1795_s25  ;;  %264 = vrot.lane.b32.xlu1 %v182_v45, %s1793_s23  ;;  %v304_v55 = vsel %vm303_vm1, 0.0, %v191_v48 }
 0x18f   :  { %v1996_v50 = vpop.permute.xlu0 %197  ;;  %v2000_v51 = vpop.permute.xlu1 %209 }
 0x190   :  { %266 = vrot.lane.b32.xlu0 %v185_v46, %s1793_s23  ;;  %222 = vrot.lane.b32.xlu1 %v185_v46, %s1795_s25 }
 0x193   :  { %v2002_v52 = vpop.permute.xlu0 %212 }
 0x194   :  { %224 = vrot.lane.b32.xlu0 %v188_v47, %s1795_s25  ;;  %268 = vrot.lane.b32.xlu1 %v188_v47, %s1793_s23  ;;  %v312_v20 = vsel %vm303_vm1, %v191_v48, %v2002_v52 }
 0x198   :  { %270 = vrot.lane.b32.xlu0 %v191_v48, %s1793_s23  ;;  %226 = vrot.lane.b32.xlu1 %v191_v48, %s1795_s25 }
 0x19c   :  { %272 = vrot.lane.b32.xlu0 %v1990_v49, %s1793_s23  ;;  %228 = vrot.lane.b32.xlu1 %v1990_v49, %s1795_s25 }
 0x1a0   :  { %274 = vrot.lane.b32.xlu1 %v1996_v50, %s1793_s23 }
 0x1f2   :  { %v215_v53 = vpop.permute.xlu1 %214  ;;  %v259_v54 = vpop.permute.xlu0 %258 }
 0x1f3   :  { %v321_v56 = vsel %vm320_vm2, %v304_v55, %v259_v54  ;;  %v305_v57 = vsel %vm303_vm1, %v1934_v28, %v215_v53  ;;  %v641_v28 = vld [vmem:[%s2336_s5 + $0x8] sm:$0xff]  ;;  %v650_v54 = vld [vmem:[%s2336_s5 + $0x50] sm:$0xff]  ;;  %v651_v55 = vld [vmem:[%s2336_s5 + $0x58] sm:$0xff] }
 0x1f4   :  { %1479 = vmatprep.mubr.msk.f32.mxu1 %vm94_vm0, %v321_v56  ;;  %v1621_v30 = vpack.c.bf16 %v641_v28, %v640_v27  ;;  %v1641_v56 = vpack.c.bf16 %v651_v55, %v650_v54 }
 0x1f6   :  { %v261_v58 = vpop.permute.xlu1 %260  ;;  %v217_v59 = vpop.permute.xlu0 %216  ;;  %1622 = vmatprep.subr.bf16.mxu0 %v1621_v30 }
 0x1f7   :  { %v322_v60 = vsel %vm320_vm2, %v305_v57, %v261_v58  ;;  %v306_v61 = vsel %vm303_vm1, %v173_v42, %v217_v59  ;;  %1624 = vmatpush3.bf16.msra.mxu0 %v1621_v30 }
 0x1f8   :  { %1480 = vmatmul.mubr.msk.f32.vlgmr.msra.gmra.mrb[0].mxu1 %vm94_vm0, %v322_v60  ;;  %1626 = vmatprep.subr.bf16.mxu0 %v1625_v33 }
 0x1fa   :  { %v219_v62 = vpop.permute.xlu1 %218  ;;  %v263_v63 = vpop.permute.xlu0 %262 }
 0x1fb   :  { %v323_v1 = vsel %vm320_vm2, %v306_v61, %v263_v63  ;;  %v307_v2 = vsel %vm303_vm1, %v176_v43, %v219_v62  ;;  %1628 = vmatpush3.bf16.msra.mxu0 %v1625_v33 }
 0x1fc   :  { %1482 = vmatprep.mubr.msk.f32.mxu1 %vm94_vm0, %v323_v1  ;;  %1630 = vmatprep.subr.bf16.mxu0 %v1629_v36 }
 0x1fe   :  { %v265_v3 = vpop.permute.xlu1 %264  ;;  %v221_v4 = vpop.permute.xlu0 %220 }
 0x1ff   :  { %v324_v5 = vsel %vm320_vm2, %v307_v2, %v265_v3  ;;  %v308_v6 = vsel %vm303_vm1, %v179_v44, %v221_v4  ;;  %1632 = vmatpush3.bf16.msra.mxu0 %v1629_v36  ;;  %v648_v44 = vld [vmem:[%s2336_s5 + $0x40] sm:$0xff] }
 0x200   :  { %1483 = vmatmul.mubr.msk.f32.gmra.mrb[2].mxu1 %vm94_vm0, %v324_v5  ;;  %1634 = vmatprep.subr.bf16.mxu0 %v1633_v39 }
 0x202   :  { %v223_v7 = vpop.permute.xlu1 %222  ;;  %v267_v8 = vpop.permute.xlu0 %266 }
 0x203   :  { %v325_v9 = vsel %vm320_vm2, %v308_v6, %v267_v8  ;;  %v309_v10 = vsel %vm303_vm1, %v182_v45, %v223_v7  ;;  %1636 = vmatpush3.bf16.msra.mxu0 %v1633_v39  ;;  %v649_v45 = vld [vmem:[%s2336_s5 + $0x48] sm:$0xff] }
 0x204   :  { %1485 = vmatprep.mubr.msk.f32.mxu1 %vm94_vm0, %v325_v9 }
 0x206   :  { %v269_v11 = vpop.permute.xlu1 %268  ;;  %v225_v12 = vpop.permute.xlu0 %224 }
 0x207   :  { %v326_v13 = vsel %vm320_vm2, %v309_v10, %v269_v11  ;;  %v310_v14 = vsel %vm303_vm1, %v185_v46, %v225_v12 }
 0x208   :  { %1486 = vmatmul.mubr.msk.f32.gmra.mrb[4].mxu1 %vm94_vm0, %v326_v13 }
 0x20a   :  { %v227_v15 = vpop.permute.xlu1 %226  ;;  %v271_v16 = vpop.permute.xlu0 %270 }
 0x20b   :  { %v311_v17 = vsel %vm303_vm1, %v188_v47, %v227_v15  ;;  %v327_v18 = vsel %vm320_vm2, %v310_v14, %v271_v16  ;;  %v1637_v47 = vpack.c.bf16 %v649_v45, %v648_v44  ;;  %v802_v44 = vld [vmem:[%s2338_s7 + $0x8] sm:$0xff] }
 0x20c   :  { %1488 = vmatprep.mubr.msk.f32.mxu1 %vm94_vm0, %v327_v18  ;;  %v328_v19 = vsel %vm320_vm2, %v311_v17, %v2000_v51 }
 0x20d   :  { %1489 = vmatmul.mubr.msk.f32.gmra.mrb[6].mxu1 %vm94_vm0, %v328_v19  ;;  %1638 = vmatprep.subr.bf16.mxu0 %v1637_v47 }
 0x20e   :  { %v229_v21 = vpop.permute.xlu1 %228  ;;  %v273_v22 = vpop.permute.xlu0 %272  ;;  %1640 = vmatpush3.bf16.msra.mxu0 %v1637_v47  ;;  %v804_v47 = vld [vmem:[%s2338_s7 + $0x18] sm:$0xff] }
 0x20f   :  { %v329_v23 = vsel %vm320_vm2, %v312_v20, %v273_v22  ;;  %v313_v24 = vsel %vm303_vm1, %v1947_v32, %v229_v21  ;;  %1642 = vmatprep.subr.bf16.mxu0 %v1641_v56 }
 0x210   :  { %1491 = vmatprep.mubr.msk.f32.mxu1 %vm94_vm0, %v329_v23 }
 0x212   :  { %v275_v25 = vpop.permute.xlu1 %274  ;;  %1644 = vmatpush3.bf16.msra.mxu0 %v1641_v56 }
 0x213   :  { %v330_v26 = vsel %vm320_vm2, %v313_v24, %v275_v25 }
 0x214   :  { %1492 = vmatmul.mubr.msk.f32.gmra.mrb[8].mxu1 %vm94_vm0, %v330_v26 }
 0x2cb   :  { %v1481_v41 = vpop.f32.mrb[0].mxu1 }
 0x2cc   :  { %v470_v42 = vadd.f32 %v1481_v41, %v2062_v40  ;;  %v464_v43 = vpop.f32.mrb[1].mxu1 }
 0x2cd   :  { %v465_v46 = vadd.f32 %v2062_v40, %v464_v43  ;;  %v801_v43 = vld [vmem:[%s2338_s7] sm:$0xff] }
 0x2ce   :  { %v544_v48 = vmax.f32 %v470_v42, 0.0  ;;  %v1645_v45 = vpack.c.bf16 %v802_v44, %v801_v43 }
 0x2cf   :  { %v543_v53 = vmax.f32 %v465_v46, 0.0  ;;  %v803_v46 = vld [vmem:[%s2338_s7 + $0x10] sm:$0xff] }
 0x2d0   :  { %1646 = vmatprep.subr.bf16.mxu1 %v1645_v45 }
 0x2d1   :  { %v559_v57 = vmax.f32 %v543_v53, %v544_v48  ;;  %1648 = vmatpush3.bf16.msra.mxu1 %v1645_v45  ;;  %v1649_v48 = vpack.c.bf16 %v804_v47, %v803_v46 }
 0x2d3   :  { %575 = vrot.lane.b32.xlu0 %v559_v57, %s1793_s23  ;;  %v1484_v58 = vpop.f32.mrb[2].mxu1  ;;  %1650 = vmatprep.subr.bf16.mxu1 %v1649_v48 }
 0x2d4   :  { %v480_v59 = vadd.f32 %v1484_v58, %v2062_v40  ;;  %v474_v60 = vpop.f32.mrb[3].mxu1 }
 0x2d5   :  { %v475_v61 = vadd.f32 %v2062_v40, %v474_v60  ;;  %1652 = vmatpush3.bf16.msra.mxu1 %v1649_v48 }
 0x2d6   :  { %v546_v62 = vmax.f32 %v480_v59, 0.0 }
 0x2d7   :  { %v545_v63 = vmax.f32 %v475_v61, 0.0 }
 0x2d9   :  { %v560_v1 = vmax.f32 %v545_v63, %v546_v62 }
 0x2db   :  { %599 = vrot.lane.b32.xlu0 %v560_v1, %s1791_s22  ;;  %577 = vrot.lane.b32.xlu1 %v560_v1, %s1793_s23  ;;  %v1487_v2 = vpop.f32.mrb[4].mxu1 }
 0x2dc   :  { %v490_v3 = vadd.f32 %v1487_v2, %v2062_v40  ;;  %v484_v4 = vpop.f32.mrb[5].mxu1 }
 0x2dd   :  { %v485_v5 = vadd.f32 %v2062_v40, %v484_v4 }
 0x2de   :  { %v548_v6 = vmax.f32 %v490_v3, 0.0 }
 0x2df   :  { %v547_v7 = vmax.f32 %v485_v5, 0.0 }
 0x2e0   :  { %v1490_v8 = vpop.f32.mrb[6].mxu1 }
 0x2e1   :  { %v561_v9 = vmax.f32 %v547_v7, %v548_v6  ;;  %v500_v10 = vadd.f32 %v1490_v8, %v2062_v40  ;;  %v494_v11 = vpop.f32.mrb[7].mxu1 }
 0x2e2   :  { %v495_v12 = vadd.f32 %v2062_v40, %v494_v11  ;;  %v2173_v11 = vld [vmem:[%s2337_s6] ss:$0 sm:$0xff] }
 0x2e3   :  { %v550_v13 = vmax.f32 %v500_v10, 0.0  ;;  %579 = vrot.lane.b32.xlu0 %v561_v9, %s1793_s23  ;;  %601 = vrot.lane.b32.xlu1 %v561_v9, %s1791_s22 }
 0x2e4   :  { %v549_v14 = vmax.f32 %v495_v12, 0.0 }
 0x2e6   :  { %v2089_v15 = vmax.f32 %v549_v14, %v550_v13 }
 0x2e7   :  { %v1493_v16 = vpop.f32.mrb[8].mxu1 }
 0x2e8   :  { %v510_v17 = vadd.f32 %v1493_v16, %v2062_v40  ;;  %603 = vrot.lane.b32.xlu0 %v2089_v15, %s1791_s22  ;;  %581 = vrot.lane.b32.xlu1 %v2089_v15, %s1793_s23  ;;  %v504_v18 = vpop.f32.mrb[9].mxu1 }
 0x2e9   :  { %v505_v19 = vadd.f32 %v2062_v40, %v504_v18 }
 0x2ea   :  { %v552_v20 = vmax.f32 %v510_v17, 0.0 }
 0x2eb   :  { %v551_v21 = vmax.f32 %v505_v19, 0.0 }
 0x2ec   :  { %200 = vrot.lane.b32.xlu0 %v1947_v32, %s1789_s1 }
 0x2ed   :  { %v2099_v22 = vmax.f32 %v551_v21, %v552_v20 }
 0x2ef   :  { %605 = vrot.lane.b32.xlu1 %v2099_v22, %s1791_s22 }
 0x2f0   :  { %206 = vrot.lane.b32.xlu0 %v1947_v32, %s1794_s24 }
 0x2f3   :  { %203 = vrot.lane.b32.xlu1 %v1947_v32, %s1791_s22 }
 0x2f7   :  { %230 = vrot.lane.b32.xlu1 %v1996_v50, %s1795_s25 }
 0x345   :  { %v576_v23 = vpop.permute.xlu0 %575 }
 0x346   :  { %v623_v24 = vsel %vm320_vm2, 0.0, %v576_v23 }
 0x34d   :  { %v600_v25 = vpop.permute.xlu0 %599  ;;  %v578_v27 = vpop.permute.xlu1 %577 }
 0x34e   :  { %v632_v26 = vsel %vm631_vm3, %v623_v24, %v600_v25  ;;  %v624_v28 = vsel %vm320_vm2, %v559_v57, %v578_v27  ;;  %v2183_v27 = vld [vmem:[%s2341_s10] ss:$0 sm:$0xff] }
 0x34f   :  { %1527 = vmatprep.mubr.msk.f32.mxu0 %vm659_vm4, %v632_v26 }
 0x355   :  { %v602_v29 = vpop.permute.xlu1 %601  ;;  %v580_v30 = vpop.permute.xlu0 %579 }
 0x356   :  { %v633_v32 = vsel %vm631_vm3, %v624_v28, %v602_v29  ;;  %v625_v31 = vsel %vm320_vm2, %v560_v1, %v580_v30 }
 0x357   :  { %1528 = vmatmul.mubr.msk.f32.vlgmr.msra.gmra.mrb[2].mxu0 %vm659_vm4, %v633_v32 }
 0x35a   :  { %v604_v33 = vpop.permute.xlu0 %603  ;;  %v582_v35 = vpop.permute.xlu1 %581 }
 0x35b   :  { %v634_v34 = vsel %vm631_vm3, %v625_v31, %v604_v33  ;;  %v626_v37 = vsel %vm320_vm2, %v561_v9, %v582_v35 }
 0x35c   :  { %1530 = vmatprep.mubr.msk.f32.mxu0 %vm659_vm4, %v634_v34 }
 0x35e   :  { %v201_v36 = vpop.permute.xlu0 %200 }
 0x35f   :  { %276 = vrot.lane.b32.xlu1 %v201_v36, %s1793_s23  ;;  %232 = vrot.lane.b32.xlu0 %v201_v36, %s1795_s25 }
 0x361   :  { %v606_v38 = vpop.permute.xlu1 %605 }
 0x362   :  { %v635_v39 = vsel %vm631_vm3, %v626_v37, %v606_v38  ;;  %v207_v42 = vpop.permute.xlu0 %206 }
 0x363   :  { %1531 = vmatmul.mubr.msk.f32.gmra.mrb[4].mxu0 %vm659_vm4, %v635_v39 }
 0x365   :  { %v204_v41 = vpop.permute.xlu1 %203 }
 0x366   :  { %234 = vrot.lane.b32.xlu1 %v204_v41, %s1795_s25  ;;  %278 = vrot.lane.b32.xlu0 %v204_v41, %s1793_s23 }
 0x369   :  { %v231_v53 = vpop.permute.xlu1 %230 }
 0x36a   :  { %280 = vrot.lane.b32.xlu1 %v207_v42, %s1793_s23  ;;  %236 = vrot.lane.b32.xlu0 %v207_v42, %s1795_s25  ;;  %v314_v54 = vsel %vm303_vm1, %v1990_v49, %v231_v53 }
 0x36e   :  { %238 = vrot.lane.b32.xlu1 %v2000_v51, %s1795_s25  ;;  %282 = vrot.lane.b32.xlu0 %v2000_v51, %s1793_s23 }
 0x372   :  { %284 = vrot.lane.b32.xlu1 %v2002_v52, %s1793_s23  ;;  %240 = vrot.lane.b32.xlu0 %v2002_v52, %s1795_s25 }
 0x376   :  { %286 = vrot.lane.b32.xlu0 %v1788_v0, %s1793_s23  ;;  %930 = vrot.lane.b32.xlu1 %v2183_v27, %s1791_s22 }
 0x3d1   :  { %v277_v55 = vpop.permute.xlu1 %276  ;;  %v233_v56 = vpop.permute.xlu0 %232 }
 0x3d2   :  { %v331_v52 = vsel %vm320_vm2, %v314_v54, %v277_v55  ;;  %v315_v57 = vsel %vm303_vm1, %v1996_v50, %v233_v56  ;;  %v2201_v54 = vld [vmem:[%s2340_s9] ss:$0 sm:$0xff] }
 0x3d3   :  { %1494 = vmatprep.mubr.msk.f32.mxu1 %vm94_vm0, %v331_v52 }
 0x3d8   :  { %v235_v58 = vpop.permute.xlu1 %234  ;;  %v279_v59 = vpop.permute.xlu0 %278 }
 0x3d9   :  { %v332_v60 = vsel %vm320_vm2, %v315_v57, %v279_v59  ;;  %v316_v61 = vsel %vm303_vm1, %v201_v36, %v235_v58 }
 0x3da   :  { %1495 = vmatmul.mubr.msk.f32.gmra.mrb[10].mxu1 %vm94_vm0, %v332_v60 }
 0x3dc   :  { %v281_v62 = vpop.permute.xlu1 %280  ;;  %v237_v63 = vpop.permute.xlu0 %236 }
 0x3dd   :  { %v333_v49 = vsel %vm320_vm2, %v316_v61, %v281_v62  ;;  %v317_v1 = vsel %vm303_vm1, %v204_v41, %v237_v63 }
 0x3de   :  { %1497 = vmatprep.mubr.msk.f32.mxu1 %vm94_vm0, %v333_v49 }
 0x3e0   :  { %v239_v2 = vpop.permute.xlu1 %238  ;;  %v283_v3 = vpop.permute.xlu0 %282 }
 0x3e1   :  { %v334_v50 = vsel %vm320_vm2, %v317_v1, %v283_v3  ;;  %v318_v4 = vsel %vm303_vm1, %v207_v42, %v239_v2 }
 0x3e2   :  { %1498 = vmatmul.mubr.msk.f32.gmra.mrb[12].mxu1 %vm94_vm0, %v334_v50 }
 0x3e4   :  { %v285_v5 = vpop.permute.xlu1 %284  ;;  %v241_v6 = vpop.permute.xlu0 %240 }
 0x3e5   :  { %v335_v7 = vsel %vm320_vm2, %v318_v4, %v285_v5  ;;  %v319_v8 = vsel %vm303_vm1, %v2000_v51, %v241_v6  ;;  %v920_v5 = vld [vmem:[%s2339_s8] sm:$0xff]  ;;  %v921_v6 = vld [vmem:[%s2339_s8 + $0x8] sm:$0xff] }
 0x3e6   :  { %1500 = vmatprep.mubr.msk.f32.mxu1 %vm94_vm0, %v335_v7  ;;  %v1796_v7 = vmov 0.0|0.0  }
 0x3e7   :  { %1653 = vmatprep.subr.bf16.mxu0 %v1796_v7  ;;  %1659 = vmatprep.subr.bf16.mxu1 %v1796_v7 }
 0x3e8   :  { %v287_v9 = vpop.permute.xlu0 %286 }
 0x3e9   :  { %v336_v10 = vsel %vm320_vm2, %v319_v8, %v287_v9  ;;  %v1654_v8 = vpack.c.bf16 %v921_v6, %v920_v5  ;;  %v923_v9 = vld [vmem:[%s2339_s8 + $0x18] sm:$0xff] }
 0x3ea   :  { %1501 = vmatmul.mubr.msk.f32.gmra.mrb[14].mxu1 %vm94_vm0, %v336_v10 }
 0x3eb   :  { %1655 = vmatpush3.bf16.msra.mxu0 %v1654_v8 }
 0x3ec   :  { %1656 = vmatprep.subr.bf16.mxu0 %v1796_v7 }
 0x42a   :  { %v1529_v12 = vpop.f32.mrb[2].mxu0 }
 0x42b   :  { %v756_v13 = vadd.f32 %v1529_v12, %v2173_v11  ;;  %v750_v14 = vpop.f32.mrb[3].mxu0 }
 0x42c   :  { %v751_v16 = vadd.f32 %v2173_v11, %v750_v14 }
 0x42d   :  { %v790_v17 = vmax.f32 %v756_v13, 0.0 }
 0x42e   :  { %v789_v18 = vmax.f32 %v751_v16, 0.0 }
 0x430   :  { %v797_v19 = vmax.f32 %v789_v18, %v790_v17 }
 0x432   :  { %1547 = vmatprep.mubr.msk.f32.mxu1 %vm320_vm2, %v797_v19 }
 0x436   :  { %v1532_v51 = vpop.f32.mrb[4].mxu0 }
 0x437   :  { %v766_v20 = vadd.f32 %v1532_v51, %v2173_v11  ;;  %v760_v21 = vpop.f32.mrb[5].mxu0 }
 0x438   :  { %v761_v23 = vadd.f32 %v2173_v11, %v760_v21 }
 0x439   :  { %v792_v24 = vmax.f32 %v766_v20, 0.0 }
 0x43a   :  { %v791_v25 = vmax.f32 %v761_v23, 0.0 }
 0x43c   :  { %v798_v26 = vmax.f32 %v791_v25, %v792_v24 }
 0x43e   :  { %1548 = vmatmul.mubr.msk.f32.vlgmr.msra.gmra.mrb[16].mxu1 %vm320_vm2, %v798_v26 }
 0x43f   :  { %1661 = vmatpush3.bf16.msra.mxu1 %v1654_v8 }
 0x440   :  { %1662 = vmatprep.subr.bf16.mxu1 %v1796_v7 }
 0x4ad   :  { %v1496_v28 = vpop.f32.mrb[10].mxu1 }
 0x4ae   :  { %v520_v29 = vadd.f32 %v1496_v28, %v2062_v40  ;;  %v514_v30 = vpop.f32.mrb[11].mxu1 }
 0x4af   :  { %v515_v32 = vadd.f32 %v2062_v40, %v514_v30 }
 0x4b0   :  { %v554_v31 = vmax.f32 %v520_v29, 0.0 }
 0x4b1   :  { %v553_v33 = vmax.f32 %v515_v32, 0.0 }
 0x4b3   :  { %v2190_v34 = vmax.f32 %v553_v33, %v554_v31 }
 0x4b5   :  { %v1499_v35 = vpop.f32.mrb[12].mxu1 }
 0x4b6   :  { %v530_v36 = vadd.f32 %v1499_v35, %v2062_v40  ;;  %v524_v37 = vpop.f32.mrb[13].mxu1 }
 0x4b7   :  { %v525_v38 = vadd.f32 %v2062_v40, %v524_v37 }
 0x4b8   :  { %v556_v39 = vmax.f32 %v530_v36, 0.0 }
 0x4b9   :  { %v555_v41 = vmax.f32 %v525_v38, 0.0 }
 0x4bb   :  { %v2194_v42 = vmax.f32 %v555_v41, %v556_v39 }
 0x4bd   :  { %v1502_v43 = vpop.f32.mrb[14].mxu1 }
 0x4be   :  { %v540_v44 = vadd.f32 %v1502_v43, %v2062_v40  ;;  %v534_v45 = vpop.f32.mrb[15].mxu1 }
 0x4bf   :  { %v535_v46 = vadd.f32 %v2062_v40, %v534_v45  ;;  %v931_v40 = vpop.permute.xlu1 %930 }
 0x4c0   :  { %v558_v47 = vmax.f32 %v540_v44, 0.0 }
 0x4c1   :  { %v557_v48 = vmax.f32 %v535_v46, 0.0 }
 0x4c3   :  { %v566_v53 = vmax.f32 %v557_v48, %v558_v47 }
 0x511   :  { %v2203_v55 = vpop.f32.mrb[16].mxu1 }
 0x512   :  { %v890_v52 = vpop.f32.mrb[17].mxu1  ;;  %v896_v47 = vadd.f32 %v2203_v55, %v2201_v54 }
 0x513   :  { %v891_v56 = vadd.f32 %v2201_v54, %v890_v52 }
 0x514   :  { %v917_v48 = vadd.f32 %v2183_v27, %v896_v47 }
 0x515   :  { %v916_v57 = vadd.f32 %v2183_v27, %v891_v56 }
 0x517   :  { %v1388_v58 = vmul.f32 -1.442695, %v916_v57 }
 0x519   :  { %1690 = vpow2.f32 %v1388_v58 }
 0x523   :  { %v1691_v59 = vpop.eup %1690 }
 0x524   :  { %v927_v60 = vadd.f32 1.0, %v1691_v59 }
 0x526   :  { %1692 = vrcp.f32 %v927_v60 }
 0x530   :  { %v1693_v61 = vpop.eup %1692 }
 0x531   :  { %v933_v62 = vmul.f32 %v1693_v61, %v931_v40  ;;  %v940_v12 = vsub.f32 1.0, %v1693_v61 }
 0x533   :  { %935 = vrot.lane.b32.xlu0 %v933_v62, %s1791_s22 }
 0x537   :  { %583 = vrot.lane.b32.xlu0 %v2099_v22, %s1793_s23 }
 0x53b   :  { %607 = vrot.lane.b32.xlu0 %v2190_v34, %s1791_s22 }
 0x53f   :  { %587 = vrot.lane.b32.xlu0 %v2194_v42, %s1793_s23 }
 0x543   :  { %611 = vrot.lane.b32.xlu0 %v566_v53, %s1791_s22 }
 0x5a5   :  { %v936_v63 = vpop.permute.xlu0 %935 }
 0x5a6   :  { %v938_v49 = vadd.f32 %v936_v63, %v891_v56 }
 0x5a8   :  { %1694 = vtanh.f32 %v938_v49 }
 0x5a9   :  { %v584_v1 = vpop.permute.xlu0 %583 }
 0x5aa   :  { %v627_v2 = vsel %vm320_vm2, %v2089_v15, %v584_v1  ;;  %v922_v15 = vld [vmem:[%s2339_s8 + $0x10] sm:$0xff] }
 0x5ab   :  { %v1657_v10 = vpack.c.bf16 %v923_v9, %v922_v15 }
 0x5ad   :  { %v608_v3 = vpop.permute.xlu0 %607  ;;  %1658 = vmatpush3.bf16.msra.mxu0 %v1657_v10  ;;  %1664 = vmatpush3.bf16.msra.mxu1 %v1657_v10 }
 0x5ae   :  { %v636_v50 = vsel %vm631_vm3, %v627_v2, %v608_v3  ;;  %1665 = vmatprep.subr.bf16.mxu0 %v1796_v7  ;;  %1671 = vmatprep.subr.bf16.mxu1 %v1796_v7 }
 0x5af   :  { %1533 = vmatprep.mubr.msk.f32.mxu0 %vm659_vm4, %v636_v50 }
 0x5b1   :  { %v588_v14 = vpop.permute.xlu0 %587 }
 0x5b2   :  { %v1695_v4 = vpop.eup %1694  ;;  %v629_v20 = vsel %vm320_vm2, %v2190_v34, %v588_v14 }
 0x5b3   :  { %942 = vrot.lane.b32.xlu1 %v1695_v4, %s1792_s2 }
 0x5b5   :  { %v612_v18 = vpop.permute.xlu0 %611 }
 0x5b6   :  { %v638_v23 = vsel %vm631_vm3, %v629_v20, %v612_v18 }
 0x5b7   :  { %585 = vrot.lane.b32.xlu1 %v2190_v34, %s1793_s23 }
 0x5bb   :  { %609 = vrot.lane.b32.xlu1 %v2194_v42, %s1791_s22 }
 0x5bf   :  { %589 = vrot.lane.b32.xlu1 %v566_v53, %s1793_s23 }
 0x5c3   :  { %613 = vrot.lane.b32.xlu1 %v1788_v0, %s1791_s22 }
 0x625   :  { %v943_v13 = vpop.permute.xlu1 %942 }
 0x626   :  { %v2245_v16 = vmul.f32 %v943_v13, %v940_v12 }
 0x628   :  { %947 = vrot.lane.b32.xlu0 %v2245_v16, %s1792_s2 }
 0x629   :  { %v586_v17 = vpop.permute.xlu1 %585 }
 0x62a   :  { %v628_v19 = vsel %vm320_vm2, %v2099_v22, %v586_v17 }
 0x62d   :  { %v610_v51 = vpop.permute.xlu1 %609 }
 0x62e   :  { %v637_v21 = vsel %vm631_vm3, %v628_v19, %v610_v51 }
 0x62f   :  { %1534 = vmatmul.mubr.msk.f32.gmra.mrb[6].mxu0 %vm659_vm4, %v637_v21 }
 0x630   :  { %1536 = vmatprep.mubr.msk.f32.mxu0 %vm659_vm4, %v638_v23 }
 0x631   :  { %v590_v24 = vpop.permute.xlu1 %589 }
 0x632   :  { %v630_v25 = vsel %vm320_vm2, %v2194_v42, %v590_v24 }
 0x635   :  { %v614_v26 = vpop.permute.xlu1 %613 }
 0x636   :  { %v639_v28 = vsel %vm631_vm3, %v630_v25, %v614_v26 }
 0x637   :  { %1537 = vmatmul.mubr.msk.f32.gmra.mrb[8].mxu0 %vm659_vm4, %v639_v28 }
 0x638   :  { %1561 = vmatprep.mubr.msk.f32.mxu0 %vm1797_vm5, %v1788_v0 }
 0x69a   :  { %v948_v22 = vpop.permute.xlu0 %947 }
 0x69b   :  { %1562 = vmatmul.mubr.msk.f32.vlgmr.msra.gmra.mrb[10].mxu0 %vm320_vm2, %v948_v22 }
 0x69c   :  { %1667 = vmatpush3.bf16.msra.mxu0 %v1654_v8  ;;  %1583 = vmatprep.mubr.msk.f32.mxu0 %vm1797_vm5, %v1788_v0 }
 0x69d   :  { %1668 = vmatprep.subr.bf16.mxu0 %v1796_v7 }
 0x6a0   :  { %1670 = vmatpush3.bf16.msra.mxu0 %v1657_v10 }
 0x702   :  { %v1535_v29 = vpop.f32.mrb[6].mxu0 }
 0x703   :  { %v776_v30 = vadd.f32 %v1535_v29, %v2173_v11  ;;  %v770_v32 = vpop.f32.mrb[7].mxu0 }
 0x704   :  { %v771_v31 = vadd.f32 %v2173_v11, %v770_v32 }
 0x705   :  { %v794_v33 = vmax.f32 %v776_v30, 0.0 }
 0x706   :  { %v793_v34 = vmax.f32 %v771_v31, 0.0 }
 0x708   :  { %v799_v35 = vmax.f32 %v793_v34, %v794_v33 }
 0x70a   :  { %v1538_v36 = vpop.f32.mrb[8].mxu0  ;;  %1550 = vmatprep.mubr.msk.f32.mxu1 %vm320_vm2, %v799_v35 }
 0x70b   :  { %v786_v37 = vadd.f32 %v1538_v36, %v2173_v11  ;;  %v780_v38 = vpop.f32.mrb[9].mxu0 }
 0x70c   :  { %v781_v39 = vadd.f32 %v2173_v11, %v780_v38 }
 0x70d   :  { %v796_v41 = vmax.f32 %v786_v37, 0.0 }
 0x70e   :  { %v795_v42 = vmax.f32 %v781_v39, 0.0 }
 0x710   :  { %v800_v43 = vmax.f32 %v795_v42, %v796_v41  ;;  %v1254_v41 = vld [vmem:[%s2342_s11 + $0x10] sm:$0xff] }
 0x712   :  { %1551 = vmatmul.mubr.msk.f32.gmra.mrb[18].mxu1 %vm320_vm2, %v800_v43  ;;  %v1255_v43 = vld [vmem:[%s2342_s11 + $0x18] sm:$0xff] }
 0x713   :  { %1572 = vmatprep.mubr.msk.f32.mxu1 %vm1797_vm5, %v1788_v0 }
 0x76e   :  { %v1017_v44 = vpop.f32.mrb[10].mxu0 }
 0x76f   :  { %v1028_v45 = vadd.f32 %v2183_v27, %v1017_v44  ;;  %v1563_v46 = vpop.f32.mrb[11].mxu0  ;;  %v1021_v11 = vadd.f32 %v1017_v44, %v917_v48  ;;  %v1675_v44 = vpack.c.bf16 %v1255_v43, %v1254_v41 }
 0x771   :  { %1030 = vrot.lane.b32.xlu1 %v1028_v45, %s1791_s22  ;;  %v1390_v53 = vmul.f32 -1.442695, %v1021_v11 }
 0x773   :  { %1696 = vpow2.f32 %v1390_v53 }
 0x77d   :  { %v1697_v52 = vpop.eup %1696 }
 0x77e   :  { %v1025_v56 = vadd.f32 1.0, %v1697_v52 }
 0x780   :  { %1698 = vrcp.f32 %v1025_v56  ;;  %v1395_v56 = vld [vmem:[%s2343_s12] ss:$0 sm:$0xff] }
 0x78a   :  { %v1699_v57 = vpop.eup %1698 }
 0x78b   :  { %v1040_v55 = vsub.f32 1.0, %v1699_v57  ;;  %v1046_v1 = vmul.f32 %v1699_v57, %v2245_v16 }
 0x7e3   :  { %v1031_v58 = vpop.permute.xlu1 %1030 }
 0x7e4   :  { %v1033_v59 = vmul.f32 %v1699_v57, %v1031_v58 }
 0x7e5   :  { %v1552_v60 = vpop.f32.mrb[18].mxu1 }
 0x7e6   :  { %1035 = vrot.lane.b32.xlu0 %v1033_v59, %s1791_s22  ;;  %v900_v40 = vpop.f32.mrb[19].mxu1  ;;  %v906_v29 = vadd.f32 %v1552_v60, %v2201_v54 }
 0x7e7   :  { %v901_v15 = vadd.f32 %v2201_v54, %v900_v40  ;;  %v1252_v54 = vld [vmem:[%s2342_s11] sm:$0xff] }
 0x7e8   :  { %v919_v30 = vadd.f32 %v2183_v27, %v906_v29 }
 0x7e9   :  { %v918_v8 = vadd.f32 %v2183_v27, %v901_v15 }
 0x858   :  { %v1036_v61 = vpop.permute.xlu0 %1035 }
 0x859   :  { %v1038_v62 = vadd.f32 %v1036_v61, %v896_v47 }
 0x85b   :  { %1700 = vtanh.f32 %v1038_v62 }
 0x865   :  { %v1701_v63 = vpop.eup %1700 }
 0x866   :  { %1042 = vrot.lane.b32.xlu1 %v1701_v63, %s1792_s2 }
 0x8d8   :  { %v1043_v49 = vpop.permute.xlu1 %1042 }
 0x8d9   :  { %v1045_v2 = vmul.f32 %v1043_v49, %v1040_v55 }
 0x8db   :  { %v1047_v3 = vadd.f32 %v1046_v1, %v1045_v2 }
 0x8dd   :  { %1049 = vrot.lane.b32.xlu0 %v1047_v3, %s1792_s2 }
 0x94f   :  { %v1050_v50 = vpop.permute.xlu0 %1049 }
 0x950   :  { %1573 = vmatmul.mubr.msk.f32.vlgmr.msra.gmra.mrb[20].mxu1 %vm320_vm2, %v1050_v50 }
 0x951   :  { %1594 = vmatprep.mubr.msk.f32.mxu1 %vm1797_vm5, %v1788_v0 }
 0xa23   :  { %v1119_v4 = vpop.f32.mrb[20].mxu1 }
 0xa24   :  { %v1130_v5 = vadd.f32 %v2183_v27, %v1119_v4  ;;  %v1574_v6 = vpop.f32.mrb[21].mxu1  ;;  %v1123_v9 = vadd.f32 %v1119_v4, %v918_v8 }
 0xa26   :  { %1132 = vrot.lane.b32.xlu1 %v1130_v5, %s1791_s22  ;;  %v1392_v10 = vmul.f32 -1.442695, %v1123_v9 }
 0xa28   :  { %1702 = vpow2.f32 %v1392_v10 }
 0xa32   :  { %v1703_v12 = vpop.eup %1702 }
 0xa33   :  { %v1127_v13 = vadd.f32 1.0, %v1703_v12 }
 0xa35   :  { %1704 = vrcp.f32 %v1127_v13 }
 0xa3f   :  { %v1705_v14 = vpop.eup %1704 }
 0xa40   :  { %v1142_v51 = vsub.f32 1.0, %v1705_v14  ;;  %v1148_v21 = vmul.f32 %v1705_v14, %v1047_v3 }
 0xa98   :  { %v1133_v16 = vpop.permute.xlu1 %1132 }
 0xa99   :  { %v1135_v17 = vmul.f32 %v1705_v14, %v1133_v16 }
 0xa9b   :  { %1137 = vrot.lane.b32.xlu0 %v1135_v17, %s1791_s22 }
 0xb0d   :  { %v1138_v0 = vpop.permute.xlu0 %1137 }
 0xb0e   :  { %v1140_v18 = vadd.f32 %v1138_v0, %v901_v15 }
 0xb10   :  { %1706 = vtanh.f32 %v1140_v18 }
 0xb1a   :  { %v1707_v19 = vpop.eup %1706 }
 0xb1b   :  { %1144 = vrot.lane.b32.xlu1 %v1707_v19, %s1792_s2 }
 0xb8d   :  { %v1145_v20 = vpop.permute.xlu1 %1144 }
 0xb8e   :  { %v1147_v23 = vmul.f32 %v1145_v20, %v1142_v51 }
 0xb90   :  { %v1149_v24 = vadd.f32 %v1148_v21, %v1147_v23 }
 0xb92   :  { %1151 = vrot.lane.b32.xlu0 %v1149_v24, %s1792_s2 }
 0xc04   :  { %v1152_v25 = vpop.permute.xlu0 %1151 }
 0xc05   :  { %1584 = vmatmul.mubr.msk.f32.vlgmr.msra.gmra.mrb[12].mxu0 %vm320_vm2, %v1152_v25 }
 0xcd8   :  { %v1221_v26 = vpop.f32.mrb[12].mxu0 }
 0xcd9   :  { %v1232_v28 = vadd.f32 %v2183_v27, %v1221_v26  ;;  %v1585_v22 = vpop.f32.mrb[13].mxu0  ;;  %v1225_v32 = vadd.f32 %v1221_v26, %v919_v30  ;;  %v1253_v27 = vld [vmem:[%s2342_s11 + $0x8] sm:$0xff] }
 0xcda   :  { %v1672_v42 = vpack.c.bf16 %v1253_v27, %v1252_v54 }
 0xcdb   :  { %1234 = vrot.lane.b32.xlu1 %v1232_v28, %s1791_s22  ;;  %v1394_v31 = vmul.f32 -1.442695, %v1225_v32 }
 0xcdc   :  { %1673 = vmatpush3.bf16.msra.mxu1 %v1672_v42 }
 0xcdd   :  { %1708 = vpow2.f32 %v1394_v31  ;;  %1674 = vmatprep.subr.bf16.mxu1 %v1796_v7 }
 0xce0   :  { %1676 = vmatpush3.bf16.msra.mxu1 %v1675_v44 }
 0xce7   :  { %v1709_v33 = vpop.eup %1708 }
 0xce8   :  { %v1229_v34 = vadd.f32 1.0, %v1709_v33 }
 0xcea   :  { %1710 = vrcp.f32 %v1229_v34 }
 0xcf4   :  { %v1711_v35 = vpop.eup %1710 }
 0xcf5   :  { %v1244_v46 = vsub.f32 1.0, %v1711_v35  ;;  %v1250_v48 = vmul.f32 %v1711_v35, %v1149_v24 }
 0xd4d   :  { %v1235_v36 = vpop.permute.xlu1 %1234 }
 0xd4e   :  { %v1237_v37 = vmul.f32 %v1711_v35, %v1235_v36 }
 0xd50   :  { %1239 = vrot.lane.b32.xlu0 %v1237_v37, %s1791_s22 }
 0xdc2   :  { %v1240_v38 = vpop.permute.xlu0 %1239 }
 0xdc3   :  { %v1242_v39 = vadd.f32 %v1240_v38, %v906_v29 }
 0xdc5   :  { %1712 = vtanh.f32 %v1242_v39 }
 0xdcf   :  { %v1713_v45 = vpop.eup %1712 }
 0xdd0   :  { %1246 = vrot.lane.b32.xlu1 %v1713_v45, %s1792_s2 }
 0xe42   :  { %v1247_v47 = vpop.permute.xlu1 %1246 }
 0xe43   :  { %v1249_v11 = vmul.f32 %v1247_v47, %v1244_v46 }
 0xe45   :  { %v1251_v53 = vadd.f32 %v1250_v48, %v1249_v11 }
 0xe47   :  { %1264 = vrot.lane.b32.xlu0 %v1251_v53, %s1792_s2 }
 0xeb9   :  { %v1265_v52 = vpop.permute.xlu0 %1264 }
 0xeba   :  { %1595 = vmatmul.mubr.msk.f32.vlgmr.msra.gmra.mrb[22].mxu1 %vm320_vm2, %v1265_v52 }
 0xf8d   :  { %v1334_v7 = vpop.f32.mrb[22].mxu1 }
 0xf8e   :  { %v1335_v57 = vadd.f32 %v1395_v56, %v1334_v7  ;;  %v1596_v58 = vpop.f32.mrb[23].mxu1 }
 0xf90   :  { %1338 = vst [vmem:[#allocation7] sm:$0xff] %v1335_v57 }
 0xf91   :  { %1769 = shalt.err (!%p1766_p6)
}
 0xf92   :  { %s1770_s7 = scalar_lea.hbm %s2344_s13, 128 }
 0xf93   :  { %p1771_p7 = scmp.ne.s32.totalorder %s2344_s13, %s1770_s7  ;;  %p1774_p8 = scmp.lt.u32.totalorder %s1770_s7, %s2344_s13 }
 0xf95   :  { %p1776_p9 = pnand %p1774_p8, %p1771_p7 }
 0xf97   :  { %1779 = shalt.err (!%p1776_p9)
}
 0xf98   :  { %1348 = dma.vmem_to_hbm [thread:$0]  %s1346_s26, 128, %s2344_s13, [#allocation4]  }
 0xf99   :  { %1784 = dma.done.wait [#allocation4], 128  }
 0xf9a   :  { %1785 = vsyncadd [#allocation4], 4294967168 }
 0xf9b   :  { %1352 = vsyncpa [#allocation3], 1 }
 0xf9c   :  { %1353 = vsyncpa [#allocation6], 1 }
 0xf9d   :  { %1354 = vsyncpa [#allocation4], 1 }

</bundles_post_ra>
